<compile_context>
chip_gen: v7x
topology: tpu7x:2x2x1
jax: 0.10.0
libtpu: 0.0.40
codegen_flags: <defaults>
</compile_context>

<pallas_src>
import functools

import jax
import jax.numpy as jnp
from jax.experimental import pallas as pl
from jax.experimental.pallas import tpu as pltpu

NIBBLES_PER_INT32 = 8


def _round_up(a, b):
    return -(-a // b) * b


def _pack_block_k(in_features):
    """K-block size the int4 packing (and hence the kernel's tk) uses."""
    for cand in (512, 256, 128, 64):
        if in_features % cand == 0:
            return cand
    raise ValueError("in_features must be a multiple of 64")


def _pick_tn(n):
    for cand in (512, 384, 256, 128):
        if cand <= n and n % cand == 0:
            return cand
    return n


# ----------------------------- Pallas kernel ---------------------------------


def _sbmm_kernel(counts_ref, eff_ref, x_ref, qw_ref, scale_ref, idx_ref,
                 o_ref, acc_ref, w_ref, *, kp_tile):
    """Grid = (M_tiles, N_tiles, K_tiles, E); (k, e) are accumulation axes.

    Per step: dequant expert eff[m, e]'s packed int4 K-tile into a bf16 VMEM
    scratch (integer-valued, exact), one MXU dot, then a (tm, tn) epilogue that
    applies the per-column scale and the per-row routing mask."""
    m = pl.program_id(0)
    k = pl.program_id(2)
    e = pl.program_id(3)
    del eff_ref  # only used by the index_maps (DMA dedup for skipped experts)

    @pl.when(jnp.logical_and(k == 0, e == 0))
    def _init():
        acc_ref[...] = jnp.zeros_like(acc_ref)

    # Skip experts that own no tokens in this M tile (counts live in SMEM).
    @pl.when(counts_ref[m, e] > 0)
    def _compute():
        q = qw_ref[0]                                   # (kp_tile, tn) int32
        # int4 -> integer-valued bf16, one slab per nibble position, written
        # straight into the (tk, tn) scratch (no concatenate, no f32 copy).
        for j in range(NIBBLES_PER_INT32):
            nib = ((q >> (4 * j)) & 0xF) - 8            # int32 in [-8, 7]
            w_ref[pl.ds(j * kp_tile, kp_tile), :] = nib.astype(jnp.bfloat16)

        partial = jnp.dot(x_ref[...], w_ref[...],
                          preferred_element_type=jnp.float32)   # (tm, tn) f32
        # Post-matmul epilogue: per-column scale * per-row routing mask.
        mask = (idx_ref[...] == e).astype(jnp.float32)          # (tm, 1)
        acc_ref[...] += partial * scale_ref[0] * mask

    @pl.when(jnp.logical_and(k == pl.num_programs(2) - 1,
                             e == pl.num_programs(3) - 1))
    def _finalize():
        o_ref[...] = acc_ref[...].astype(o_ref.dtype)


def llama_sbmm(x, indices, qweight, scales, *, tm=None, tn=None):
    """LLamaSBmm.forward: y[t] = x[t] @ dequant(W[indices[t]]).

    x:        (T, K) float
    indices:  (T,)   int32 expert id per row
    qweight:  (E, K // 8, N) int32  -- packed int4 (blocked nibbles per K-block)
    scales:   (E, 1, N) float32     -- groupsize == infeatures (one group)
    returns   (T, N) bfloat16
    """
    T, K = x.shape
    E, Kp, N = qweight.shape
    assert Kp * NIBBLES_PER_INT32 == K
    assert scales.shape == (E, 1, N)
    assert N % 128 == 0, "output must stay lane-dense (multiple of 128)"
    assert K % 64 == 0

    tk = _pack_block_k(K)          # must match the offline packing block
    kp_t = tk // NIBBLES_PER_INT32

    if tm is None:
        tm = 512 if T > 512 else _round_up(T, 8)
    assert tm % 8 == 0
    if tn is None:
        tn = _pick_tn(N)
    assert N % tn == 0 and tn % 128 == 0

    x = x.astype(jnp.bfloat16)
    indices = indices.astype(jnp.int32)

    # Ragged T: pad tokens with expert id -1 (matches no expert -> zero rows).
    Tp = _round_up(T, tm)
    if Tp != T:
        x = jnp.pad(x, ((0, Tp - T), (0, 0)))
        indices = jnp.pad(indices, (0, Tp - T), constant_values=-1)
    m_tiles = Tp // tm
    idx2d = indices.reshape(Tp, 1)

    # Routing metadata (traced, cheap):
    #   counts[m, e] -> gates pl.when skip of experts absent from tile m
    #   eff[m, e]    -> index_map dedup target: for zero-token experts it
    #                   repeats a neighbouring present expert's id so Pallas
    #                   skips the weight DMA (block index unchanged).
    eids = jnp.arange(E, dtype=jnp.int32)
    onehot = indices.reshape(m_tiles, tm)[:, :, None] == eids[None, None, :]
    counts = jnp.sum(onehot, axis=1).astype(jnp.int32)              # (m_tiles, E)
    present = counts > 0
    marked = jnp.where(present, eids[None, :], -1)
    eff_fwd = jax.lax.cummax(marked, axis=1)
    first = jnp.argmax(present, axis=1).astype(jnp.int32)           # 0 if none
    eff = jnp.where(eff_fwd >= 0, eff_fwd, first[:, None]).astype(jnp.int32)

    grid = (m_tiles, N // tn, K // tk, E)

    # VMEM budget from the tile plan (double-buffered streams + scratch).
    bytes_est = (2 * (tm * tk * 2) + 2 * (kp_t * tn * 4) + 2 * (tn * 4)
                 + 2 * (tm * 4) + 2 * (tm * tn * 2)
                 + tm * tn * 4 + tk * tn * 2)
    vmem_limit = int(min(48 * 2**20, max(3 * bytes_est, 16 * 2**20)))

    return pl.pallas_call(
        functools.partial(_sbmm_kernel, kp_tile=kp_t),
        out_shape=jax.ShapeDtypeStruct((Tp, N), jnp.bfloat16),
        grid_spec=pltpu.PrefetchScalarGridSpec(
            num_scalar_prefetch=2,
            grid=grid,
            in_specs=[
                pl.BlockSpec((tm, tk), lambda m, n, k, e, c, f: (m, k)),          # x
                pl.BlockSpec((1, kp_t, tn),
                             lambda m, n, k, e, c, f: (f[m, e], k, n)),           # qweight
                pl.BlockSpec((1, 1, tn),
                             lambda m, n, k, e, c, f: (f[m, e], 0, n)),           # scales
                pl.BlockSpec((tm, 1), lambda m, n, k, e, c, f: (m, 0)),           # indices
            ],
            out_specs=pl.BlockSpec((tm, tn), lambda m, n, k, e, c, f: (m, n)),
            scratch_shapes=[
                pltpu.VMEM((tm, tn), jnp.float32),      # f32 accumulator
                pltpu.VMEM((tk, tn), jnp.bfloat16),     # dequantised weight tile
            ],
        ),
        compiler_params=pltpu.CompilerParams(
            dimension_semantics=("parallel", "parallel", "arbitrary", "arbitrary"),
            vmem_limit_bytes=vmem_limit,
        ),
    )(counts, eff, x, qweight, scales, idx2d)[:T]


# ----------------------------- weight synthesis --------------------------------


def make_quant_expert_weights(key, num_experts, in_features, out_features):
    """Synthesise int4, 2:4-sparse (along in_features), per-column-scaled expert
    weights, packed 8 nibbles per int32 with per-K-block blocked nibble layout."""
    k1, k2 = jax.random.split(key)
    E, K, N = num_experts, in_features, out_features
    KB = _pack_block_k(K)
    q = jax.random.randint(k1, (E, K, N), -8, 8, dtype=jnp.int32)
    # 2:4 sparsity along K: keep (at least) the 2 largest magnitudes per group of 4.
    qg = q.reshape(E, K // 4, 4, N)
    absq = jnp.abs(qg)
    thresh = jnp.sort(absq, axis=2)[:, :, 2:3, :]
    q24 = jnp.where(absq >= thresh, qg, 0).reshape(E, K, N)
    # Pack: within K-block b, nibble j of word g holds row k = b*KB + j*(KB//8) + g,
    # stored unsigned as (w + 8).
    wp = (q24 + 8).astype(jnp.uint32).reshape(
        E, K // KB, NIBBLES_PER_INT32, KB // NIBBLES_PER_INT32, N)
    packed = jnp.zeros((E, K // KB, KB // NIBBLES_PER_INT32, N), jnp.uint32)
    for j in range(NIBBLES_PER_INT32):
        packed = packed | (wp[:, :, j] << (4 * j))
    qweight = jax.lax.bitcast_convert_type(packed.reshape(E, K // 8, N), jnp.int32)
    scales = 0.02 * jax.random.uniform(k2, (E, 1, N), minval=0.5, maxval=1.5,
                                       dtype=jnp.float32)
    return qweight, scales


# ----------------------------- pure-JAX reference ------------------------------


def _dequant_reference(qweight, in_features):
    E, Kp, N = qweight.shape
    KB = _pack_block_k(in_features)
    kp_t = KB // NIBBLES_PER_INT32
    q = qweight.reshape(E, in_features // KB, kp_t, N)
    nibs = [((q >> (4 * j)) & 0xF) for j in range(NIBBLES_PER_INT32)]
    w = jnp.concatenate(nibs, axis=2) - 8                 # (E, nb, KB, N)
    return w.reshape(E, in_features, N).astype(jnp.float32)


def sbmm_reference(x, indices, qweight, scales):
    E = qweight.shape[0]
    K = x.shape[1]
    w_int = _dequant_reference(qweight, K)                # exact integer weights
    xf = x.astype(jnp.bfloat16).astype(jnp.float32)       # mirror kernel's bf16 x
    y_all = jnp.einsum("tk,ekn->etn", xf, w_int) * scales # scale post-matmul
    onehot = (indices[None, :] == jnp.arange(E)[:, None]).astype(jnp.float32)
    return jnp.einsum("et,etn->tn", onehot, y_all)


# ----------------------------- main --------------------------------------------


if __name__ == "__main__":
    key = jax.random.PRNGKey(0)
    k_w, k_x, k_i = jax.random.split(key, 3)

    num_experts, in_features, out_features, tokens = 8, 1024, 256, 96
    qweight, scales = make_quant_expert_weights(k_w, num_experts, in_features,
                                                out_features)
    x = jax.random.normal(k_x, (tokens, in_features), dtype=jnp.float32)
    # Sorted ("clustered") routing, as the sorted-bmm module expects; also
    # exercises the per-tile count gating / weight-DMA dedup and T padding.
    indices = jnp.sort(jax.random.randint(k_i, (tokens,), 0, num_experts,
                                          dtype=jnp.int32))

    run = jax.jit(functools.partial(llama_sbmm, tm=64))
    out = run(x, indices, qweight, scales)
    jax.block_until_ready(out)

    ref = sbmm_reference(x, indices, qweight, scales)
    assert out.shape == (tokens, out_features)
    assert bool(jnp.all(jnp.isfinite(out)))
    max_err = float(jnp.max(jnp.abs(out.astype(jnp.float32) - ref)))
    assert bool(jnp.allclose(out.astype(jnp.float32), ref,
                             atol=2e-2, rtol=2e-2)), max_err
    print("KERNEL_OK")
</pallas_src>

<mosaic_0001>
module attributes {stable_mosaic.version = 11 : i64} {
  func.func @_sbmm_kernel(%arg0: i32, %arg1: i32, %arg2: i32, %arg3: i32, %arg4: memref<2x8xi32, #tpu.memory_space<smem>>, %arg5: memref<2x8xi32, #tpu.memory_space<smem>>, %arg6: memref<64x512xbf16, #tpu.memory_space<vmem>>, %arg7: memref<1x64x256xi32, #tpu.memory_space<vmem>>, %arg8: memref<1x1x256xf32, #tpu.memory_space<vmem>>, %arg9: memref<64x1xi32, #tpu.memory_space<vmem>>, %arg10: memref<64x256xbf16, #tpu.memory_space<vmem>>, %arg11: memref<64x256xf32, #tpu.memory_space<vmem>>, %arg12: memref<512x256xbf16, #tpu.memory_space<vmem>>) attributes {dimension_semantics = [#tpu.dimension_semantics<parallel>, #tpu.dimension_semantics<parallel>, #tpu.dimension_semantics<arbitrary>, #tpu.dimension_semantics<arbitrary>], iteration_bounds = array<i64: 2, 1, 2, 8>, scalar_prefetch = 2 : i64, scratch_operands = 2 : i64, tpu.core_type = #tpu.core_type<tc>, window_params = [{transform_indices = @transform_0, window_bounds = array<i64: 64, 512>}, {transform_indices = @transform_1, window_bounds = array<i64: 1, 64, 256>}, {transform_indices = @transform_2, window_bounds = array<i64: 1, 1, 256>}, {transform_indices = @transform_3, window_bounds = array<i64: 64, 1>}, {transform_indices = @transform_4, window_bounds = array<i64: 64, 256>}]} {
    %c0_i32 = arith.constant 0 : i32
    %0 = arith.cmpi eq, %arg2, %c0_i32 : i32
    %c0_i32_0 = arith.constant 0 : i32
    %1 = arith.cmpi eq, %arg3, %c0_i32_0 : i32
    %2 = arith.andi %0, %1 : i1
    %3 = arith.extui %2 : i1 to i32
    %c0_i32_1 = arith.constant 0 : i32
    %4 = arith.cmpi ne, %3, %c0_i32_1 : i32
    scf.if %4 {
      %cst = arith.constant 0.000000e+00 : f32
      %16 = vector.broadcast %cst : f32 to vector<64x256xf32>
      %c0 = arith.constant 0 : index
      %c0_5 = arith.constant 0 : index
      %17 = vector.load %arg11[%c0, %c0_5] : memref<64x256xf32, #tpu.memory_space<vmem>>, vector<64x256xf32>
      tpu.vector_store %arg11[%c0, %c0_5], %16 {strides = array<i32>} : memref<64x256xf32, #tpu.memory_space<vmem>>, vector<64x256xf32>,
    } else {
    }
    %5 = arith.index_cast %arg0 : i32 to index
    %6 = arith.index_cast %arg3 : i32 to index
    %7 = memref.load %arg4[%5, %6] : memref<2x8xi32, #tpu.memory_space<smem>>
    %c0_i32_2 = arith.constant 0 : i32
    %8 = arith.cmpi sgt, %7, %c0_i32_2 : i32
    %9 = arith.extui %8 : i1 to i32
    %c0_i32_3 = arith.constant 0 : i32
    %10 = arith.cmpi ne, %9, %c0_i32_3 : i32
    scf.if %10 {
      %c0 = arith.constant 0 : index
      %c0_5 = arith.constant 0 : index
      %c0_6 = arith.constant 0 : index
      %16 = vector.load %arg7[%c0, %c0_5, %c0_6] : memref<1x64x256xi32, #tpu.memory_space<vmem>>, vector<1x64x256xi32>
      %17 = vector.shape_cast %16 : vector<1x64x256xi32> to vector<64x256xi32>
      %c0_i32_7 = arith.constant 0 : i32
      %18 = vector.broadcast %c0_i32_7 : i32 to vector<64x256xi32>
      %19 = arith.shrsi %17, %18 : vector<64x256xi32>
      %c15_i32 = arith.constant 15 : i32
      %20 = vector.broadcast %c15_i32 : i32 to vector<64x256xi32>
      %21 = arith.andi %19, %20 : vector<64x256xi32>
      %c8_i32 = arith.constant 8 : i32
      %22 = vector.broadcast %c8_i32 : i32 to vector<64x256xi32>
      %23 = arith.subi %21, %22 : vector<64x256xi32>
      %24 = arith.sitofp %23 : vector<64x256xi32> to vector<64x256xbf16>
      %c0_8 = arith.constant 0 : index
      %c0_9 = arith.constant 0 : index
      %25 = vector.load %arg12[%c0_8, %c0_9] : memref<512x256xbf16, #tpu.memory_space<vmem>>, vector<64x256xbf16>
      tpu.vector_store %arg12[%c0_8, %c0_9], %24 {strides = array<i32>} : memref<512x256xbf16, #tpu.memory_space<vmem>>, vector<64x256xbf16>,
      %c4_i32 = arith.constant 4 : i32
      %26 = vector.broadcast %c4_i32 : i32 to vector<64x256xi32>
      %27 = arith.shrsi %17, %26 : vector<64x256xi32>
      %c15_i32_10 = arith.constant 15 : i32
      %28 = vector.broadcast %c15_i32_10 : i32 to vector<64x256xi32>
      %29 = arith.andi %27, %28 : vector<64x256xi32>
      %c8_i32_11 = arith.constant 8 : i32
      %30 = vector.broadcast %c8_i32_11 : i32 to vector<64x256xi32>
      %31 = arith.subi %29, %30 : vector<64x256xi32>
      %32 = arith.sitofp %31 : vector<64x256xi32> to vector<64x256xbf16>
      %c64 = arith.constant 64 : index
      %c0_12 = arith.constant 0 : index
      %33 = vector.load %arg12[%c64, %c0_12] : memref<512x256xbf16, #tpu.memory_space<vmem>>, vector<64x256xbf16>
      tpu.vector_store %arg12[%c64, %c0_12], %32 {strides = array<i32>} : memref<512x256xbf16, #tpu.memory_space<vmem>>, vector<64x256xbf16>,
      %c8_i32_13 = arith.constant 8 : i32
      %34 = vector.broadcast %c8_i32_13 : i32 to vector<64x256xi32>
      %35 = arith.shrsi %17, %34 : vector<64x256xi32>
      %c15_i32_14 = arith.constant 15 : i32
      %36 = vector.broadcast %c15_i32_14 : i32 to vector<64x256xi32>
      %37 = arith.andi %35, %36 : vector<64x256xi32>
      %c8_i32_15 = arith.constant 8 : i32
      %38 = vector.broadcast %c8_i32_15 : i32 to vector<64x256xi32>
      %39 = arith.subi %37, %38 : vector<64x256xi32>
      %40 = arith.sitofp %39 : vector<64x256xi32> to vector<64x256xbf16>
      %c128 = arith.constant 128 : index
      %c0_16 = arith.constant 0 : index
      %41 = vector.load %arg12[%c128, %c0_16] : memref<512x256xbf16, #tpu.memory_space<vmem>>, vector<64x256xbf16>
      tpu.vector_store %arg12[%c128, %c0_16], %40 {strides = array<i32>} : memref<512x256xbf16, #tpu.memory_space<vmem>>, vector<64x256xbf16>,
      %c12_i32 = arith.constant 12 : i32
      %42 = vector.broadcast %c12_i32 : i32 to vector<64x256xi32>
      %43 = arith.shrsi %17, %42 : vector<64x256xi32>
      %c15_i32_17 = arith.constant 15 : i32
      %44 = vector.broadcast %c15_i32_17 : i32 to vector<64x256xi32>
      %45 = arith.andi %43, %44 : vector<64x256xi32>
      %c8_i32_18 = arith.constant 8 : i32
      %46 = vector.broadcast %c8_i32_18 : i32 to vector<64x256xi32>
      %47 = arith.subi %45, %46 : vector<64x256xi32>
      %48 = arith.sitofp %47 : vector<64x256xi32> to vector<64x256xbf16>
      %c192 = arith.constant 192 : index
      %c0_19 = arith.constant 0 : index
      %49 = vector.load %arg12[%c192, %c0_19] : memref<512x256xbf16, #tpu.memory_space<vmem>>, vector<64x256xbf16>
      tpu.vector_store %arg12[%c192, %c0_19], %48 {strides = array<i32>} : memref<512x256xbf16, #tpu.memory_space<vmem>>, vector<64x256xbf16>,
      %c16_i32 = arith.constant 16 : i32
      %50 = vector.broadcast %c16_i32 : i32 to vector<64x256xi32>
      %51 = arith.shrsi %17, %50 : vector<64x256xi32>
      %c15_i32_20 = arith.constant 15 : i32
      %52 = vector.broadcast %c15_i32_20 : i32 to vector<64x256xi32>
      %53 = arith.andi %51, %52 : vector<64x256xi32>
      %c8_i32_21 = arith.constant 8 : i32
      %54 = vector.broadcast %c8_i32_21 : i32 to vector<64x256xi32>
      %55 = arith.subi %53, %54 : vector<64x256xi32>
      %56 = arith.sitofp %55 : vector<64x256xi32> to vector<64x256xbf16>
      %c256 = arith.constant 256 : index
      %c0_22 = arith.constant 0 : index
      %57 = vector.load %arg12[%c256, %c0_22] : memref<512x256xbf16, #tpu.memory_space<vmem>>, vector<64x256xbf16>
      tpu.vector_store %arg12[%c256, %c0_22], %56 {strides = array<i32>} : memref<512x256xbf16, #tpu.memory_space<vmem>>, vector<64x256xbf16>,
      %c20_i32 = arith.constant 20 : i32
      %58 = vector.broadcast %c20_i32 : i32 to vector<64x256xi32>
      %59 = arith.shrsi %17, %58 : vector<64x256xi32>
      %c15_i32_23 = arith.constant 15 : i32
      %60 = vector.broadcast %c15_i32_23 : i32 to vector<64x256xi32>
      %61 = arith.andi %59, %60 : vector<64x256xi32>
      %c8_i32_24 = arith.constant 8 : i32
      %62 = vector.broadcast %c8_i32_24 : i32 to vector<64x256xi32>
      %63 = arith.subi %61, %62 : vector<64x256xi32>
      %64 = arith.sitofp %63 : vector<64x256xi32> to vector<64x256xbf16>
      %c320 = arith.constant 320 : index
      %c0_25 = arith.constant 0 : index
      %65 = vector.load %arg12[%c320, %c0_25] : memref<512x256xbf16, #tpu.memory_space<vmem>>, vector<64x256xbf16>
      tpu.vector_store %arg12[%c320, %c0_25], %64 {strides = array<i32>} : memref<512x256xbf16, #tpu.memory_space<vmem>>, vector<64x256xbf16>,
      %c24_i32 = arith.constant 24 : i32
      %66 = vector.broadcast %c24_i32 : i32 to vector<64x256xi32>
      %67 = arith.shrsi %17, %66 : vector<64x256xi32>
      %c15_i32_26 = arith.constant 15 : i32
      %68 = vector.broadcast %c15_i32_26 : i32 to vector<64x256xi32>
      %69 = arith.andi %67, %68 : vector<64x256xi32>
      %c8_i32_27 = arith.constant 8 : i32
      %70 = vector.broadcast %c8_i32_27 : i32 to vector<64x256xi32>
      %71 = arith.subi %69, %70 : vector<64x256xi32>
      %72 = arith.sitofp %71 : vector<64x256xi32> to vector<64x256xbf16>
      %c384 = arith.constant 384 : index
      %c0_28 = arith.constant 0 : index
      %73 = vector.load %arg12[%c384, %c0_28] : memref<512x256xbf16, #tpu.memory_space<vmem>>, vector<64x256xbf16>
      tpu.vector_store %arg12[%c384, %c0_28], %72 {strides = array<i32>} : memref<512x256xbf16, #tpu.memory_space<vmem>>, vector<64x256xbf16>,
      %c28_i32 = arith.constant 28 : i32
      %74 = vector.broadcast %c28_i32 : i32 to vector<64x256xi32>
      %75 = arith.shrsi %17, %74 : vector<64x256xi32>
      %c15_i32_29 = arith.constant 15 : i32
      %76 = vector.broadcast %c15_i32_29 : i32 to vector<64x256xi32>
      %77 = arith.andi %75, %76 : vector<64x256xi32>
      %c8_i32_30 = arith.constant 8 : i32
      %78 = vector.broadcast %c8_i32_30 : i32 to vector<64x256xi32>
      %79 = arith.subi %77, %78 : vector<64x256xi32>
      %80 = arith.sitofp %79 : vector<64x256xi32> to vector<64x256xbf16>
      %c448 = arith.constant 448 : index
      %c0_31 = arith.constant 0 : index
      %81 = vector.load %arg12[%c448, %c0_31] : memref<512x256xbf16, #tpu.memory_space<vmem>>, vector<64x256xbf16>
      tpu.vector_store %arg12[%c448, %c0_31], %80 {strides = array<i32>} : memref<512x256xbf16, #tpu.memory_space<vmem>>, vector<64x256xbf16>,
      %c0_32 = arith.constant 0 : index
      %c0_33 = arith.constant 0 : index
      %82 = vector.load %arg6[%c0_32, %c0_33] : memref<64x512xbf16, #tpu.memory_space<vmem>>, vector<64x512xbf16>
      %c0_34 = arith.constant 0 : index
      %c0_35 = arith.constant 0 : index
      %83 = vector.load %arg12[%c0_34, %c0_35] : memref<512x256xbf16, #tpu.memory_space<vmem>>, vector<512x256xbf16>
      %cst = arith.constant dense<0.000000e+00> : vector<64x256xf32>
      %84 = tpu.matmul %82, %83, %cst {dimension_numbers = #tpu.dot_dimension_numbers<[1], [0], [0], [1], [0, 0, 1, 1], [], []>} : vector<64x512xbf16>, vector<512x256xbf16>, vector<64x256xf32> -> vector<64x256xf32>
      %c0_36 = arith.constant 0 : index
      %c0_37 = arith.constant 0 : index
      %85 = vector.load %arg9[%c0_36, %c0_37] : memref<64x1xi32, #tpu.memory_space<vmem>>, vector<64x1xi32>
      %86 = vector.broadcast %arg3 : i32 to vector<64x1xi32>
      %87 = arith.cmpi eq, %85, %86 : vector<64x1xi32>
      %88 = arith.extui %87 : vector<64x1xi1> to vector<64x1xi32>
      %89 = arith.sitofp %88 : vector<64x1xi32> to vector<64x1xf32>
      %c0_38 = arith.constant 0 : index
      %c0_39 = arith.constant 0 : index
      %90 = vector.load %arg11[%c0_38, %c0_39] : memref<64x256xf32, #tpu.memory_space<vmem>>, vector<64x256xf32>
      %c0_40 = arith.constant 0 : index
      %c0_41 = arith.constant 0 : index
      %c0_42 = arith.constant 0 : index
      %91 = vector.load %arg8[%c0_40, %c0_41, %c0_42] : memref<1x1x256xf32, #tpu.memory_space<vmem>>, vector<1x1x256xf32>
      %92 = vector.shape_cast %91 : vector<1x1x256xf32> to vector<1x256xf32>
      %93 = vector.broadcast %92 : vector<1x256xf32> to vector<64x256xf32>
      %94 = arith.mulf %84, %93 : vector<64x256xf32>
      %95 = vector.broadcast %89 : vector<64x1xf32> to vector<64x256xf32>
      %96 = arith.mulf %94, %95 : vector<64x256xf32>
      %97 = arith.addf %90, %96 : vector<64x256xf32>
      %c0_43 = arith.constant 0 : index
      %c0_44 = arith.constant 0 : index
      %98 = vector.load %arg11[%c0_43, %c0_44] : memref<64x256xf32, #tpu.memory_space<vmem>>, vector<64x256xf32>
      tpu.vector_store %arg11[%c0_43, %c0_44], %97 {strides = array<i32>} : memref<64x256xf32, #tpu.memory_space<vmem>>, vector<64x256xf32>,
    } else {
    }
    %c1_i32 = arith.constant 1 : i32
    %11 = arith.cmpi eq, %arg2, %c1_i32 : i32
    %c7_i32 = arith.constant 7 : i32
    %12 = arith.cmpi eq, %arg3, %c7_i32 : i32
    %13 = arith.andi %11, %12 : i1
    %14 = arith.extui %13 : i1 to i32
    %c0_i32_4 = arith.constant 0 : i32
    %15 = arith.cmpi ne, %14, %c0_i32_4 : i32
    scf.if %15 {
      %c0 = arith.constant 0 : index
      %c0_5 = arith.constant 0 : index
      %16 = vector.load %arg11[%c0, %c0_5] : memref<64x256xf32, #tpu.memory_space<vmem>>, vector<64x256xf32>
      %17 = arith.truncf %16 : vector<64x256xf32> to vector<64x256xbf16>
      %c0_6 = arith.constant 0 : index
      %c0_7 = arith.constant 0 : index
      %18 = vector.load %arg10[%c0_6, %c0_7] : memref<64x256xbf16, #tpu.memory_space<vmem>>, vector<64x256xbf16>
      tpu.vector_store %arg10[%c0_6, %c0_7], %17 {strides = array<i32>} : memref<64x256xbf16, #tpu.memory_space<vmem>>, vector<64x256xbf16>,
    } else {
    }
    return
  }
  func.func @transform_0(%arg0: i32, %arg1: i32, %arg2: i32, %arg3: i32, %arg4: memref<2x8xi32, #tpu.memory_space<smem>>, %arg5: memref<2x8xi32, #tpu.memory_space<smem>>) -> (i32, i32) {
    %c0_i32 = arith.constant 0 : i32
    return %arg0, %arg2 : i32, i32
  }
  func.func @transform_1(%arg0: i32, %arg1: i32, %arg2: i32, %arg3: i32, %arg4: memref<2x8xi32, #tpu.memory_space<smem>>, %arg5: memref<2x8xi32, #tpu.memory_space<smem>>) -> (i32, i32, i32) {
    %0 = arith.index_cast %arg0 : i32 to index
    %1 = arith.index_cast %arg3 : i32 to index
    %2 = memref.load %arg5[%0, %1] : memref<2x8xi32, #tpu.memory_space<smem>>
    %c0_i32 = arith.constant 0 : i32
    return %2, %arg2, %arg1 : i32, i32, i32
  }
  func.func @transform_2(%arg0: i32, %arg1: i32, %arg2: i32, %arg3: i32, %arg4: memref<2x8xi32, #tpu.memory_space<smem>>, %arg5: memref<2x8xi32, #tpu.memory_space<smem>>) -> (i32, i32, i32) {
    %0 = arith.index_cast %arg0 : i32 to index
    %1 = arith.index_cast %arg3 : i32 to index
    %2 = memref.load %arg5[%0, %1] : memref<2x8xi32, #tpu.memory_space<smem>>
    %c0_i32 = arith.constant 0 : i32
    %c0_i32_0 = arith.constant 0 : i32
    return %2, %c0_i32, %arg1 : i32, i32, i32
  }
  func.func @transform_3(%arg0: i32, %arg1: i32, %arg2: i32, %arg3: i32, %arg4: memref<2x8xi32, #tpu.memory_space<smem>>, %arg5: memref<2x8xi32, #tpu.memory_space<smem>>) -> (i32, i32) {
    %c0_i32 = arith.constant 0 : i32
    %c0_i32_0 = arith.constant 0 : i32
    return %arg0, %c0_i32 : i32, i32
  }
  func.func @transform_4(%arg0: i32, %arg1: i32, %arg2: i32, %arg3: i32, %arg4: memref<2x8xi32, #tpu.memory_space<smem>>, %arg5: memref<2x8xi32, #tpu.memory_space<smem>>) -> (i32, i32) {
    %c0_i32 = arith.constant 0 : i32
    return %arg0, %arg1 : i32, i32
  }
}

</mosaic_0001>

<bundles_post_ra>
// kernel: eq.10
= control target key start
LH: loop header
LB: loop body
LE: loop exit
PB: predicated region body
PF: predicated region fallthrough
CT: control target
= control target key end

     0   :  { %vm7_vm0 = vcmask 523264   ;;  %s39_s0 = inlined_call_operand.vmem [shape: s32[128], index: 0, kind: input, shape index: {}]   ;;  %s40_s1 = inlined_call_operand.vmem [shape: s32[2,64], index: 1, kind: output, shape index: {}]  }
   0x1   :  { %v4_v0 = vld [vmem:[%s39_s0] sm:$0x1]  ;;  %s22_s0 = smov 64  }
   0x2   :  { %5 = vst [vmem:[#allocation1] sm:$0x1] %v4_v0 }
   0x9   :  { %v9_v1 = vld [vmem:[#allocation1] sm:$0x1]  }
   0xa   :  { %v6_v2 = vld [vmem:[#allocation1] sm:$0x1]   ;;  %10 = vrot.lane.b32.xlu0 %v9_v1, %s22_s0 }
   0xb   :  { %8 = vst.msk [vmem:[#allocation0] sm:$0x1] %vm7_vm0, %v6_v2  }
  0x7c   :  { %v11_v3 = vpop.permute.xlu0 %10  }
  0x7d   :  { %14 = vst.msk [vmem:[#allocation0 + $0x1] sm:$0x1] %vm7_vm0, %v11_v3  }
  0x84   :  { %v18_v4 = vld [vmem:[#allocation0] sm:$0x3] }
  0x85   :  { %20 = vst [vmem:[%s40_s1] sm:$0x3] %v18_v4 }

// kernel: llama_sbmm.1
= control target key start
LH: loop header
LB: loop body
LE: loop exit
PB: predicated region body
PF: predicated region fallthrough
CT: control target
= control target key end

     0   :  { %s2806_s0 = inlined_call_operand.vmem [shape: s32[2,8], index: 0, kind: input, shape index: {}]   ;;  %s2807_s2 = inlined_call_operand.vmem [shape: bf16[128,1024], index: 2, kind: input, shape index: {}]   ;;  %s2808_s3 = inlined_call_operand.vmem [shape: s32[8,128,256], index: 3, kind: input, shape index: {}]   ;;  %s2809_s4 = inlined_call_operand.vmem [shape: f32[8,1,256], index: 4, kind: input, shape index: {}]   ;;  %s2810_s5 = inlined_call_operand.vmem [shape: s32[128,1], index: 5, kind: input, shape index: {}]   ;;  %s2811_s6 = inlined_call_operand.vmem [shape: bf16[128,256], index: 6, kind: output, shape index: {}]   ;;  %s2812_s1 = inlined_call_operand.vmem [shape: s32[2,8], index: 1, kind: input, shape index: {}]  }
   0x1   :  { %2817 = sst [smem:[#allocation14_spill]] %s2807_s2  ;;  %s11_s23 = sshll.u32 %s2806_s0, 4  ;;  %s12_s23 = int_to_ptr.vmem [resolvable:$true] %s11_s23 }
   0x2   :  { %s15_s26 = sshll.u32 %s2812_s1, 4  ;;  %s2272_s27 = scalar_lea.vmem %s12_s23, 32  ;;  %s16_s26 = int_to_ptr.vmem [resolvable:$true] %s15_s26 }
   0x3   :  { %p2273_p0 = scmp.ne.s32.totalorder %s12_s23, %s2272_s27  ;;  %p2277_p1 = scmp.lt.s32.totalorder %s12_s23, %s12_s23 }
   0x4   :  { %p2278_p2 = scmp.lt.s32.totalorder %s2272_s27, %s2272_s27 }
   0x6   :  { %p2279_p3 = por %p2278_p2, %p2277_p1 }
   0x8   :  { %p2280_p4 = pnand %p2279_p3, %p2273_p0 }
   0xa   :  { %2283 = shalt.err (!%p2280_p4)  }
   0xb   :  { %s2370_s28 = smov [#allocation5]   ;;  %s2284_s29 = scalar_lea.vmem %s16_s26, 32 }
   0xc   :  { %14 = dma.vmem_to_smem %s12_s23, 32, %s2370_s28, [#allocation4] }
   0xd   :  { %p2285_p5 = scmp.ne.s32.totalorder %s16_s26, %s2284_s29  ;;  %p2289_p6 = scmp.lt.s32.totalorder %s16_s26, %s16_s26 }
   0xe   :  { %p2290_p7 = scmp.lt.s32.totalorder %s2284_s29, %s2284_s29 }
  0x10   :  { %p2291_p8 = por %p2290_p7, %p2289_p6 }
  0x12   :  { %p2292_p9 = pnand %p2291_p8, %p2285_p5 }
  0x14   :  { %2295 = shalt.err (!%p2292_p9)  }
  0x15   :  { %s2371_s0 = smov [#allocation6]  }
  0x16   :  { %18 = dma.vmem_to_smem %s16_s26, 32, %s2371_s0, [#allocation4] }
  0x17   :  { %2332 = dma.done.wait [#allocation4], 64 }
  0x18   :  { %2333 = vsyncadd [#allocation4], 4294967232 }
  0x19   :  { %20 = sfence }
  0x1a   :  { %s2416_s1 = smov 0   ;;  %s2418_s30 = smov 0  }
  0x1b   :  { %s2420_s7 = smov 0   ;;  %s2422_s8 = smov 0  }
  0x1c   :  { %s2424_s9 = smov 0   ;;  %s2426_s10 = smov 0  }
  0x1d   :  { %s2428_s11 = smov 0   ;;  %s2430_s12 = smov 0  }
  0x1e   :  { %s2432_s13 = smov 0  }
  0x1f LB: > { %2818 = sst [smem:[#allocation9_spill]] %s2360_s11  ;;  %s41_s14 = sadd.s32 1, %s2356_s10  ;;  %s2368_s13 = sphi %s2432_s13, %s26_s13   ;;  %s2364_s12 = sphi %s2430_s12, %s2833_s12   ;;  %s2360_s11 = sphi %s2428_s11, %s2827_s11   ;;  %s2356_s10 = sphi %s2426_s10, %s2832_s10   ;;  %s2352_s9 = sphi %s2424_s9, %s2825_s9   ;;  %s2348_s8 = sphi %s2422_s8, %s2824_s8   ;;  %s2344_s7 = sphi %s2420_s7, %s2831_s7   ;;  %s2340_s30 = sphi %s2418_s30, %s2830_s30   ;;  %s2336_s1 = sphi %s2416_s1, %s2829_s1  }
  0x20   : > { %2819 = sst [smem:[#allocation10_spill]] %s2364_s12  ;;  %p42_p10 = scmp.ge.s32.totalorder %s41_s14, 8 }
  0x21   : > { %s44_s15 = sadd.s32 1, %s2360_s11  ;;  %p68_p11 = scmp.ne.s32.totalorder %s2340_s30, %s2336_s1 }
  0x22   : > { %s2835_s14 = smov (%p42_p10, %s41_s14), 0  ;;  %s2837_s15 = smov (!%p42_p10, %s44_s15), %s2360_s11 }
  0x23   : > { %2820 = sst [smem:[#allocation11_spill]] %s2835_s14  ;;  %p69_p12 = scmp.eq.s32.totalorder %s2368_s13, 0 }
  0x24   : > { %p46_p13 = scmp.ge.s32.totalorder %s2837_s15, 2  ;;  %s52_s16 = sadd.s32 1, %s2364_s12 }
  0x25   : > { %p70_p0 = por %p69_p12, %p68_p11  ;;  %s61_s20 = sadd.s32 1, %s2340_s30 }
  0x26   : > { %s2839_s15 = smov (%p46_p13, %s2837_s15), 0  ;;  %s2841_s16 = smov (!%p46_p13, %s52_s16), %s2364_s12 }
  0x27   : > { %2821 = sst [smem:[#allocation12_spill]] %s2839_s15  ;;  %p54_p1 = scmp.ge.s32.totalorder %s2841_s16, 2 }
  0x28   : > { %s57_s17 = ssub.s32 %s2360_s11, %s2839_s15  ;;  %p1915_p3 = scmp.ge.s32.totalorder %s2368_s13, 32 }
  0x29   : > { %s2843_s16 = smov (%p54_p1, %s2841_s16), 0 }
  0x2a   : > { %2822 = sst [smem:[#allocation13_spill]] %s2843_s16  ;;  %s56_s18 = ssub.s32 %s2364_s12, %s2843_s16 }
  0x2b   : > { %s58_s19 = sor.u32 %s57_s17, %s56_s18  ;;  %238 = sbr.rel (%p1915_p3) target bundleno = 68 (0x44), region = 16 }
  0x2c   : > { %p59_p2 = scmp.eq.s32.totalorder %s58_s19, 0 }
  0x2e   : > { %s2481_s21 = scalar_select %p59_p2, %s2340_s30, %s61_s20  }
  0x32   : > { %241 = sbr.rel (!%p70_p0) target bundleno = 68 (0x44), region = 20  ;;  %s243_s22 = sand.u32 (%p70_p0), 1, %s2340_s30  }
  0x33   : > { %s1918_s23 = sshll.u32 (%p70_p0), %s2360_s11, 2  ;;  %s1916_s24 = sshll.u32 (%p70_p0), %s243_s22, 7 }
  0x34   : > { %s2115_s25 = sshll.u32 (%p70_p0), %s2364_s12, 6  ;;  %s2823_s2 = sld [smem:[#allocation14_spill]] (%p70_p0) }
  0x35   : > { %s249_s26 = sadd.s32 (%p70_p0), %s2115_s25, %s1918_s23  ;;  %s245_s17 = scalar_lea.vmem (%p70_p0), [#allocation7], %s1916_s24 }
  0x36   : > { %s1920_s27 = sshll.u32 (%p70_p0), %s249_s26, 2 }
  0x3a   : > { %s2490_s0 = scalar_lea.vmem %s2823_s2, %s1920_s27 }
  0x3b   : > { %v264_v0 = vld [vmem:[%s2490_s0] sm:$0xff]  ;;  %v266_v1 = vld [vmem:[%s2490_s0 + $0x8] sm:$0xff] }
  0x3c   : > { %v268_v2 = vld [vmem:[%s2490_s0 + $0x20] sm:$0xff]  ;;  %265 = vst [vmem:[%s245_s17] sm:$0xff] %v264_v0  ;;  %267 = vst [vmem:[%s245_s17 + $0x8] sm:$0xff] %v266_v1  ;;  %v270_v3 = vld [vmem:[%s2490_s0 + $0x28] sm:$0xff] }
  0x3d   : > { %269 = vst [vmem:[%s245_s17 + $0x10] sm:$0xff] %v268_v2  ;;  %v272_v4 = vld [vmem:[%s2490_s0 + $0x40] sm:$0xff]  ;;  %v274_v5 = vld [vmem:[%s2490_s0 + $0x48] sm:$0xff]  ;;  %271 = vst [vmem:[%s245_s17 + $0x18] sm:$0xff] %v270_v3 }
  0x3e   : > { %273 = vst [vmem:[%s245_s17 + $0x20] sm:$0xff] %v272_v4  ;;  %275 = vst [vmem:[%s245_s17 + $0x28] sm:$0xff] %v274_v5  ;;  %v276_v6 = vld [vmem:[%s2490_s0 + $0x60] sm:$0xff]  ;;  %v278_v7 = vld [vmem:[%s2490_s0 + $0x68] sm:$0xff] }
  0x3f   : > { %v280_v8 = vld [vmem:[%s2490_s0 + $0x80] sm:$0xff]  ;;  %277 = vst [vmem:[%s245_s17 + $0x30] sm:$0xff] %v276_v6  ;;  %279 = vst [vmem:[%s245_s17 + $0x38] sm:$0xff] %v278_v7  ;;  %v282_v9 = vld [vmem:[%s2490_s0 + $0x88] sm:$0xff] }
  0x40   : > { %281 = vst [vmem:[%s245_s17 + $0x40] sm:$0xff] %v280_v8  ;;  %v284_v10 = vld [vmem:[%s2490_s0 + $0xa0] sm:$0xff]  ;;  %v286_v11 = vld [vmem:[%s2490_s0 + $0xa8] sm:$0xff]  ;;  %283 = vst [vmem:[%s245_s17 + $0x48] sm:$0xff] %v282_v9 }
  0x41   : > { %285 = vst [vmem:[%s245_s17 + $0x50] sm:$0xff] %v284_v10  ;;  %287 = vst [vmem:[%s245_s17 + $0x58] sm:$0xff] %v286_v11  ;;  %v288_v12 = vld [vmem:[%s2490_s0 + $0xc0] sm:$0xff]  ;;  %v290_v13 = vld [vmem:[%s2490_s0 + $0xc8] sm:$0xff] }
  0x42   : > { %v292_v14 = vld [vmem:[%s2490_s0 + $0xe0] sm:$0xff]  ;;  %289 = vst [vmem:[%s245_s17 + $0x60] sm:$0xff] %v288_v12  ;;  %291 = vst [vmem:[%s245_s17 + $0x68] sm:$0xff] %v290_v13  ;;  %v294_v15 = vld [vmem:[%s2490_s0 + $0xe8] sm:$0xff] }
  0x43   : > { %293 = vst [vmem:[%s245_s17 + $0x70] sm:$0xff] %v292_v14  ;;  %295 = vst [vmem:[%s245_s17 + $0x78] sm:$0xff] %v294_v15 }
  0x44 PF: > { %p1921_p4 = scmp.ge.s32.totalorder %s2368_s13, 1  ;;  %p372_p5 = scmp.lt.s32.totalorder %s2368_s13, 33 }
  0x46   : > { %p373_p6 = pnand %p1921_p4, %p372_p5 }
  0x47   : > { %s379_s18 = sand.u32 (!%p373_p6), 1, %s2336_s1   ;;  %s454_s19 = sshra.s32 (!%p373_p6), %s2344_s7, 7 }
  0x48   : > { %376 = sbr.rel (%p373_p6) target bundleno = 503 (0x1f7), region = 55  ;;  %s2512_s20 = sshll.u32 (!%p373_p6), %s379_s18, 7 }
  0x49   : > { %s456_s22 = sadd.s32 (!%p373_p6), %s2352_s9, %s454_s19  ;;  %s459_s24 = sand.u32 (!%p373_p6), 127, %s2344_s7 }
  0x4a   : > { %s1923_s23 = sshll.u32 (!%p373_p6), %s456_s22, 7  ;;  %s1924_s25 = sshll.u32 (!%p373_p6), %s2348_s8, 3 }
  0x4b   : > { %s2517_s26 = sadd.s32 (!%p373_p6), %s1923_s23, %s459_s24  ;;  %p466_p7 = scmp.lt.s32.totalorder (!%p373_p6), %s1924_s25, 15 }
  0x4c   : > { %s461_s27 = sld [smem:[#allocation6 + %s2517_s26]] (!%p373_p6)  ;;  %s1930_s29 = sshll.u32 (!%p373_p6), %s2352_s9, 3 }
  0x4d   : > { %s493_s28 = sld [smem:[#allocation6 + %s2517_s26]] (!%p373_p6)  ;;  %p512_p8 = scmp.lt.s32.totalorder (!%p373_p6), %s1930_s29, 15 }
  0x4e   : > { %p529_p9 = scmp.eq.s32.totalorder (!%p373_p6), %s2348_s8, 0  ;;  %p530_p10 = scmp.eq.s32.totalorder (!%p373_p6), %s2344_s7, 0 }
  0x4f   : > { %s2845_s25 = smov (!%p466_p7, %s1924_s25), 15  ;;  %s2847_s29 = smov (!%p512_p8, %s1930_s29), 15 }
  0x50   : > { %s1925_s1 = sshll.u32 %s2845_s25, 1  ;;  %s1931_s0 = sshll.u32 %s2847_s29, 3 }
  0x51   : > { %p531_p13 = pnand %p530_p10, %p529_p9  ;;  %s2527_s22 = scalar_lea.vmem %s2810_s5, %s1931_s0 }
  0x52   : > { %p464_p11 = scmp.lt.s32.totalorder %s461_s27, 7  ;;  %s2542_s11 = scalar_lea.vmem %s2811_s6, %s1931_s0  ;;  %v2372_v16 = vmov (!%p531_p13), 0.0  }
  0x53   : > { %p495_p12 = scmp.lt.s32.totalorder %s493_s28, 7  ;;  %s2545_s18 = scalar_lea.vmem [#allocation7], %s2512_s20  ;;  %535 = vst [vmem:[#allocation2] sm:$0xff] (!%p531_p13), %v2372_v16  ;;  %536 = vst [vmem:[#allocation2 + $0x8] sm:$0xff] (!%p531_p13), %v2372_v16 }
  0x54   : > { %s2849_s27 = smov (!%p464_p11, %s461_s27), 7  ;;  %534 = sbr.rel (%p531_p13) target bundleno = 92 (0x5c), region = 63 }
  0x55   : > { %s2851_s28 = smov (!%p495_p12, %s493_s28), 7  ;;  %s1926_s17 = sshll.u32 %s2849_s27, 5  ;;  %537 = vst [vmem:[#allocation2 + $0x10] sm:$0xff] (!%p531_p13), %v2372_v16  ;;  %538 = vst [vmem:[#allocation2 + $0x18] sm:$0xff] (!%p531_p13), %v2372_v16 }
  0x56   : > { %s473_s23 = sadd.s32 %s1926_s17, %s1925_s1  ;;  %s1929_s9 = sshll.u32 %s2851_s28, 1  ;;  %539 = vst [vmem:[#allocation2 + $0x20] sm:$0xff] (!%p531_p13), %v2372_v16  ;;  %540 = vst [vmem:[#allocation2 + $0x28] sm:$0xff] (!%p531_p13), %v2372_v16 }
  0x57   : > { %s1927_s24 = sshll.u32 %s473_s23, 3  ;;  %s2532_s16 = scalar_lea.vmem %s2809_s4, %s1929_s9  ;;  %541 = vst [vmem:[#allocation2 + $0x30] sm:$0xff] (!%p531_p13), %v2372_v16  ;;  %542 = vst [vmem:[#allocation2 + $0x38] sm:$0xff] (!%p531_p13), %v2372_v16 }
  0x58   : > { %s2537_s29 = scalar_lea.vmem %s2808_s3, %s1927_s24  ;;  %543 = vst [vmem:[#allocation2 + $0x40] sm:$0xff] (!%p531_p13), %v2372_v16  ;;  %544 = vst [vmem:[#allocation2 + $0x48] sm:$0xff] (!%p531_p13), %v2372_v16 }
  0x59   : > { %545 = vst [vmem:[#allocation2 + $0x50] sm:$0xff] (!%p531_p13), %v2372_v16  ;;  %546 = vst [vmem:[#allocation2 + $0x58] sm:$0xff] (!%p531_p13), %v2372_v16 }
  0x5a   : > { %547 = vst [vmem:[#allocation2 + $0x60] sm:$0xff] (!%p531_p13), %v2372_v16  ;;  %548 = vst [vmem:[#allocation2 + $0x68] sm:$0xff] (!%p531_p13), %v2372_v16 }
  0x5b   : > { %549 = vst [vmem:[#allocation2 + $0x70] sm:$0xff] %v2372_v16  ;;  %550 = vst [vmem:[#allocation2 + $0x78] sm:$0xff] %v2372_v16 }
  0x5c PF: > { %s558_s2 = sld [smem:[#allocation5 + %s2517_s26]] }
  0x62   : > { %p1936_p0 = scmp.le.s32.totalorder %s558_s2, 0 }
  0x63   : > { %v2549_v17 = vld [vmem:[%s2537_s29 + $0x8] sm:$0xff] (!%p1936_p0)  ;;  %v2552_v18 = vld [vmem:[%s2537_s29 + $0x18] sm:$0xff] (!%p1936_p0)  ;;  %v2555_v19 = vld [vmem:[%s2537_s29] sm:$0xff] (!%p1936_p0) }
  0x64   : > { %562 = sbr.rel (%p1936_p0) target bundleno = 491 (0x1eb), region = 67  ;;  %v580_v20 = vand.u32 (!%p1936_p0), 15, %v2549_v17  ;;  %v582_v21 = vand.u32 (!%p1936_p0), 15, %v2552_v18  ;;  %v2560_v22 = vld [vmem:[%s2537_s29 + $0x10] sm:$0xff] (!%p1936_p0)  ;;  %v579_v23 = vand.u32 (!%p1936_p0), 15, %v2555_v19  ;;  %v884_v24 = vshra.s32 (!%p1936_p0), %v2549_v17, 16 }
  0x65   : > { %v581_v25 = vand.u32 (!%p1936_p0), 15, %v2560_v22  ;;  %v886_v26 = vshra.s32 (!%p1936_p0), %v2552_v18, 16  ;;  %v883_v27 = vshra.s32 (!%p1936_p0), %v2555_v19, 16  ;;  %v885_v28 = vshra.s32 (!%p1936_p0), %v2560_v22, 16  ;;  %v2569_v37 = vld [vmem:[%s2537_s29 + $0x28] sm:$0xff] (!%p1936_p0)  ;;  %v2572_v38 = vld [vmem:[%s2537_s29 + $0x38] sm:$0xff] (!%p1936_p0) }
  0x66   : > { %v1938_v29 = vadd.s32 (!%p1936_p0), 4294967288, %v580_v20  ;;  %v1940_v30 = vadd.s32 (!%p1936_p0), 4294967288, %v582_v21  ;;  %v1937_v31 = vadd.s32 (!%p1936_p0), 4294967288, %v579_v23  ;;  %v900_v32 = vand.u32 (!%p1936_p0), 15, %v884_v24  ;;  %v2575_v47 = vld [vmem:[%s2537_s29 + $0x20] sm:$0xff] (!%p1936_p0)  ;;  %v2578_v48 = vld [vmem:[%s2537_s29 + $0x30] sm:$0xff] (!%p1936_p0) }
  0x67   : > { %v1939_v33 = vadd.s32 (!%p1936_p0), 4294967288, %v581_v25  ;;  %v902_v34 = vand.u32 (!%p1936_p0), 15, %v886_v26  ;;  %v899_v35 = vand.u32 (!%p1936_p0), 15, %v883_v27  ;;  %v901_v36 = vand.u32 (!%p1936_p0), 15, %v885_v28  ;;  %v2583_v57 = vld [vmem:[%s2537_s29 + $0x48] sm:$0xff] (!%p1936_p0)  ;;  %v2590_v6 = vld [vmem:[%s2537_s29 + $0x58] sm:$0xff] (!%p1936_p0) }
  0x68   : > { %v612_v39 = vcvt.s32.f32 (!%p1936_p0), %v1938_v29  ;;  %v614_v40 = vcvt.s32.f32 (!%p1936_p0), %v1940_v30  ;;  %v611_v41 = vcvt.s32.f32 (!%p1936_p0), %v1937_v31  ;;  %v2002_v42 = vadd.s32 (!%p1936_p0), 4294967288, %v900_v32  ;;  %v2593_v7 = vld [vmem:[%s2537_s29 + $0x40] sm:$0xff] (!%p1936_p0)  ;;  %v2245_v20 = vld [vmem:[%s2545_s18 + $0xc] ss:$16 sps:$4 sm:$0xff] (!%p1936_p0)   ;;  %v2601_v26 = vld [vmem:[%s2537_s29 + $0x50] sm:$0xff] (!%p1936_p0) }
  0x69   : > { %v613_v43 = vcvt.s32.f32 (!%p1936_p0), %v1939_v33  ;;  %v2004_v44 = vadd.s32 (!%p1936_p0), 4294967288, %v902_v34  ;;  %v2001_v45 = vadd.s32 (!%p1936_p0), 4294967288, %v899_v35  ;;  %v2003_v46 = vadd.s32 (!%p1936_p0), 4294967288, %v901_v36  ;;  %v2242_v8 = vld [vmem:[%s2545_s18 + $0x4] ss:$16 sps:$4 sm:$0xff] (!%p1936_p0)   ;;  %1468 = vmatprep.mubr.bf16.mxu0 (!%p1936_p0), %v2245_v20 }
  0x6a   : > { %v628_v49 = vpack.c.bf16 (!%p1936_p0), %v614_v40, %v612_v39  ;;  %v932_v50 = vcvt.s32.f32 (!%p1936_p0), %v2002_v42  ;;  %v584_v51 = vand.u32 (!%p1936_p0), 15, %v2569_v37  ;;  %v586_v52 = vand.u32 (!%p1936_p0), 15, %v2572_v38  ;;  %1395 = vmatprep.mubr.bf16.mxu1 (!%p1936_p0), %v2242_v8 }
  0x6b   : > { %v627_v53 = vpack.c.bf16 %v613_v43, %v611_v41  ;;  %v934_v54 = vcvt.s32.f32 %v2004_v44  ;;  %v931_v55 = vcvt.s32.f32 %v2001_v45  ;;  %v933_v56 = vcvt.s32.f32 %v2003_v46  ;;  %v2608_v45 = vld [vmem:[%s2537_s29 + $0x68] sm:$0xff] }
  0x6c   : > { %1363 = vmatprep.subr.bf16.mxu1 %v628_v49  ;;  %v1942_v58 = vadd.s32 4294967288, %v584_v51  ;;  %v1944_v59 = vadd.s32 4294967288, %v586_v52  ;;  %v583_v60 = vand.u32 15, %v2575_v47  ;;  %v585_v61 = vand.u32 15, %v2578_v48  ;;  %v2612_v52 = vld [vmem:[%s2537_s29 + $0x78] sm:$0xff] }
  0x6d   : > { %1364 = vmatpush1.bf16.msra.mxu1 %v627_v53  ;;  %v948_v62 = vpack.c.bf16 %v934_v54, %v932_v50  ;;  %v947_v63 = vpack.c.bf16 %v933_v56, %v931_v55  ;;  %v888_v0 = vshra.s32 %v2569_v37, 16  ;;  %v890_v1 = vshra.s32 %v2572_v38, 16 }
  0x6e   : > { %v616_v2 = vcvt.s32.f32 %v1942_v58  ;;  %v618_v3 = vcvt.s32.f32 %v1944_v59  ;;  %v1941_v4 = vadd.s32 4294967288, %v583_v60  ;;  %v1943_v5 = vadd.s32 4294967288, %v585_v61  ;;  %v2617_v58 = vld [vmem:[%s2537_s29 + $0x60] sm:$0xff] }
  0x6f   : > { %1436 = vmatprep.subr.bf16.mxu0 %v948_v62  ;;  %v904_v9 = vand.u32 15, %v888_v0  ;;  %v906_v10 = vand.u32 15, %v890_v1  ;;  %v887_v11 = vshra.s32 %v2575_v47, 16  ;;  %v889_v12 = vshra.s32 %v2578_v48, 16 }
  0x70   : > { %1437 = vmatpush1.bf16.msra.mxu0 %v947_v63  ;;  %v630_v13 = vpack.c.bf16 %v618_v3, %v616_v2  ;;  %v615_v14 = vcvt.s32.f32 %v1941_v4  ;;  %v617_v15 = vcvt.s32.f32 %v1943_v5  ;;  %v588_v16 = vand.u32 15, %v2583_v57  ;;  %v2622_v3 = vld [vmem:[%s2537_s29 + $0x70] sm:$0xff] }
  0x71   : > { %v2006_v21 = vadd.s32 4294967288, %v904_v9  ;;  %v2008_v23 = vadd.s32 4294967288, %v906_v10  ;;  %v903_v24 = vand.u32 15, %v887_v11  ;;  %v905_v25 = vand.u32 15, %v889_v12 }
  0x72   : > { %1365 = vmatprep.subr.bf16.mxu1 %v630_v13  ;;  %v629_v27 = vpack.c.bf16 %v617_v15, %v615_v14  ;;  %v590_v28 = vand.u32 15, %v2590_v6  ;;  %v1946_v29 = vadd.s32 4294967288, %v588_v16  ;;  %v587_v30 = vand.u32 15, %v2593_v7 }
  0x73   : > { %v936_v31 = vcvt.s32.f32 %v2006_v21  ;;  %v938_v32 = vcvt.s32.f32 %v2008_v23  ;;  %v2005_v33 = vadd.s32 4294967288, %v903_v24  ;;  %v2007_v34 = vadd.s32 4294967288, %v905_v25 }
  0x74   : > { %1366 = vmatpush1.bf16.msra.mxu1 %v629_v27  ;;  %v1948_v35 = vadd.s32 4294967288, %v590_v28  ;;  %v620_v36 = vcvt.s32.f32 %v1946_v29  ;;  %v589_v39 = vand.u32 15, %v2601_v26  ;;  %v1945_v40 = vadd.s32 4294967288, %v587_v30 }
  0x75   : > { %v950_v41 = vpack.c.bf16 %v938_v32, %v936_v31  ;;  %v935_v42 = vcvt.s32.f32 %v2005_v33  ;;  %v937_v43 = vcvt.s32.f32 %v2007_v34  ;;  %v892_v44 = vshra.s32 %v2583_v57, 16 }
  0x76   : > { %v622_v46 = vcvt.s32.f32 %v1948_v35  ;;  %v1947_v49 = vadd.s32 4294967288, %v589_v39  ;;  %v619_v50 = vcvt.s32.f32 %v1945_v40  ;;  %v894_v51 = vshra.s32 %v2590_v6, 16 }
  0x77   : > { %1438 = vmatprep.subr.bf16.mxu0 %v950_v41  ;;  %v949_v53 = vpack.c.bf16 %v937_v43, %v935_v42  ;;  %v908_v54 = vand.u32 15, %v892_v44  ;;  %v891_v55 = vshra.s32 %v2593_v7, 16  ;;  %v893_v56 = vshra.s32 %v2601_v26, 16 }
  0x78   : > { %v632_v59 = vpack.c.bf16 %v622_v46, %v620_v36  ;;  %v621_v60 = vcvt.s32.f32 %v1947_v49  ;;  %v910_v61 = vand.u32 15, %v894_v51  ;;  %v592_v62 = vand.u32 15, %v2608_v45 }
  0x79   : > { %1439 = vmatpush1.bf16.msra.mxu0 %v949_v53  ;;  %v2010_v63 = vadd.s32 4294967288, %v908_v54  ;;  %v907_v0 = vand.u32 15, %v891_v55  ;;  %v909_v1 = vand.u32 15, %v893_v56  ;;  %v594_v2 = vand.u32 15, %v2612_v52 }
  0x7a   : > { %1367 = vmatprep.subr.bf16.mxu1 %v632_v59  ;;  %v631_v4 = vpack.c.bf16 %v621_v60, %v619_v50  ;;  %v2012_v5 = vadd.s32 4294967288, %v910_v61  ;;  %v1950_v8 = vadd.s32 4294967288, %v592_v62  ;;  %v591_v9 = vand.u32 15, %v2617_v58 }
  0x7b   : > { %v940_v10 = vcvt.s32.f32 %v2010_v63  ;;  %v2009_v11 = vadd.s32 4294967288, %v907_v0  ;;  %v2011_v12 = vadd.s32 4294967288, %v909_v1  ;;  %v1952_v13 = vadd.s32 4294967288, %v594_v2 }
  0x7c   : > { %1368 = vmatpush1.bf16.msra.mxu1 %v631_v4  ;;  %v942_v14 = vcvt.s32.f32 %v2012_v5  ;;  %v624_v15 = vcvt.s32.f32 %v1950_v8  ;;  %v593_v16 = vand.u32 15, %v2622_v3  ;;  %v1949_v20 = vadd.s32 4294967288, %v591_v9 }
  0x7d   : > { %v939_v21 = vcvt.s32.f32 %v2009_v11  ;;  %v941_v23 = vcvt.s32.f32 %v2011_v12  ;;  %v626_v24 = vcvt.s32.f32 %v1952_v13  ;;  %v896_v25 = vshra.s32 %v2608_v45, 16 }
  0x7e   : > { %v952_v27 = vpack.c.bf16 %v942_v14, %v940_v10  ;;  %v1951_v28 = vadd.s32 4294967288, %v593_v16  ;;  %v623_v29 = vcvt.s32.f32 %v1949_v20  ;;  %v898_v30 = vshra.s32 %v2612_v52, 16 }
  0x7f   : > { %v951_v31 = vpack.c.bf16 %v941_v23, %v939_v21  ;;  %v634_v32 = vpack.c.bf16 %v626_v24, %v624_v15  ;;  %v912_v33 = vand.u32 15, %v896_v25  ;;  %v895_v34 = vshra.s32 %v2617_v58, 16 }
  0x80   : > { %1440 = vmatprep.subr.bf16.mxu0 %v952_v27  ;;  %v625_v35 = vcvt.s32.f32 %v1951_v28  ;;  %v914_v36 = vand.u32 15, %v898_v30  ;;  %v897_v39 = vshra.s32 %v2622_v3, 16  ;;  %v644_v40 = vshra.s32 %v2549_v17, 4 }
  0x81   : > { %1441 = vmatpush1.bf16.msra.mxu0 %v951_v31  ;;  %1369 = vmatprep.subr.bf16.mxu1 %v634_v32  ;;  %v2014_v41 = vadd.s32 4294967288, %v912_v33  ;;  %v911_v42 = vand.u32 15, %v895_v34  ;;  %v646_v43 = vshra.s32 %v2552_v18, 4  ;;  %v643_v44 = vshra.s32 %v2555_v19, 4 }
  0x82   : > { %v633_v46 = vpack.c.bf16 %v625_v35, %v623_v29  ;;  %v2016_v49 = vadd.s32 4294967288, %v914_v36  ;;  %v913_v50 = vand.u32 15, %v897_v39  ;;  %v660_v51 = vand.u32 15, %v644_v40 }
  0x83   : > { %v944_v53 = vcvt.s32.f32 %v2014_v41  ;;  %v2013_v54 = vadd.s32 4294967288, %v911_v42  ;;  %v662_v55 = vand.u32 15, %v646_v43  ;;  %v645_v56 = vshra.s32 %v2560_v22, 4 }
  0x84   : > { %1370 = vmatpush1.bf16.msra.mxu1 %v633_v46  ;;  %v946_v59 = vcvt.s32.f32 %v2016_v49  ;;  %v2015_v60 = vadd.s32 4294967288, %v913_v50  ;;  %v1954_v61 = vadd.s32 4294967288, %v660_v51  ;;  %v659_v62 = vand.u32 15, %v643_v44 }
  0x85   : > { %v943_v63 = vcvt.s32.f32 %v2013_v54  ;;  %v1956_v0 = vadd.s32 4294967288, %v662_v55  ;;  %v661_v1 = vand.u32 15, %v645_v56  ;;  %v964_v2 = vshra.s32 %v2549_v17, 20 }
  0x86   : > { %v954_v4 = vpack.c.bf16 %v946_v59, %v944_v53  ;;  %v945_v5 = vcvt.s32.f32 %v2015_v60  ;;  %v692_v8 = vcvt.s32.f32 %v1954_v61  ;;  %v1953_v9 = vadd.s32 4294967288, %v659_v62 }
  0x87   : > { %v694_v10 = vcvt.s32.f32 %v1956_v0  ;;  %v1955_v11 = vadd.s32 4294967288, %v661_v1  ;;  %v966_v12 = vshra.s32 %v2552_v18, 20  ;;  %v980_v13 = vand.u32 15, %v964_v2 }
  0x88   : > { %1442 = vmatprep.subr.bf16.mxu0 %v954_v4  ;;  %v953_v14 = vpack.c.bf16 %v945_v5, %v943_v63  ;;  %v691_v15 = vcvt.s32.f32 %v1953_v9  ;;  %v963_v16 = vshra.s32 %v2555_v19, 20  ;;  %v965_v20 = vshra.s32 %v2560_v22, 20 }
  0x89   : > { %v708_v21 = vpack.c.bf16 %v694_v10, %v692_v8  ;;  %v693_v23 = vcvt.s32.f32 %v1955_v11  ;;  %v982_v24 = vand.u32 15, %v966_v12  ;;  %v2018_v25 = vadd.s32 4294967288, %v980_v13 }
  0x8a   : > { %1443 = vmatpush1.bf16.msra.mxu0 %v953_v14  ;;  %v979_v27 = vand.u32 15, %v963_v16  ;;  %v981_v28 = vand.u32 15, %v965_v20  ;;  %v648_v29 = vshra.s32 %v2569_v37, 4  ;;  %v650_v30 = vshra.s32 %v2572_v38, 4 }
  0x8b   : > { %1371 = vmatprep.subr.bf16.mxu1 %v708_v21  ;;  %v707_v31 = vpack.c.bf16 %v693_v23, %v691_v15  ;;  %v2020_v32 = vadd.s32 4294967288, %v982_v24  ;;  %v1012_v33 = vcvt.s32.f32 %v2018_v25  ;;  %v647_v34 = vshra.s32 %v2575_v47, 4 }
  0x8c   : > { %v2017_v35 = vadd.s32 4294967288, %v979_v27  ;;  %v2019_v36 = vadd.s32 4294967288, %v981_v28  ;;  %v664_v39 = vand.u32 15, %v648_v29  ;;  %v666_v40 = vand.u32 15, %v650_v30 }
  0x8d   : > { %1372 = vmatpush1.bf16.msra.mxu1 %v707_v31  ;;  %v1014_v41 = vcvt.s32.f32 %v2020_v32  ;;  %v649_v42 = vshra.s32 %v2578_v48, 4  ;;  %v663_v43 = vand.u32 15, %v647_v34  ;;  %v968_v44 = vshra.s32 %v2569_v37, 20 }
  0x8e   : > { %v1011_v46 = vcvt.s32.f32 %v2017_v35  ;;  %v1013_v49 = vcvt.s32.f32 %v2019_v36  ;;  %v1958_v50 = vadd.s32 4294967288, %v664_v39  ;;  %v1960_v51 = vadd.s32 4294967288, %v666_v40 }
  0x8f   : > { %v1028_v53 = vpack.c.bf16 %v1014_v41, %v1012_v33  ;;  %v665_v54 = vand.u32 15, %v649_v42  ;;  %v1957_v55 = vadd.s32 4294967288, %v663_v43  ;;  %v970_v56 = vshra.s32 %v2572_v38, 20 }
  0x90   : > { %v1027_v59 = vpack.c.bf16 %v1013_v49, %v1011_v46  ;;  %v696_v60 = vcvt.s32.f32 %v1958_v50  ;;  %v698_v61 = vcvt.s32.f32 %v1960_v51  ;;  %v984_v62 = vand.u32 15, %v968_v44 }
  0x91   : > { %1444 = vmatprep.subr.bf16.mxu0 %v1028_v53  ;;  %v1959_v63 = vadd.s32 4294967288, %v665_v54  ;;  %v695_v0 = vcvt.s32.f32 %v1957_v55  ;;  %v986_v1 = vand.u32 15, %v970_v56  ;;  %v967_v2 = vshra.s32 %v2575_v47, 20 }
  0x92   : > { %1445 = vmatpush1.bf16.msra.mxu0 %v1027_v59  ;;  %v710_v4 = vpack.c.bf16 %v698_v61, %v696_v60  ;;  %v2022_v5 = vadd.s32 4294967288, %v984_v62  ;;  %v969_v8 = vshra.s32 %v2578_v48, 20  ;;  %v652_v9 = vshra.s32 %v2583_v57, 4 }
  0x93   : > { %v697_v10 = vcvt.s32.f32 %v1959_v63  ;;  %v2024_v11 = vadd.s32 4294967288, %v986_v1  ;;  %v983_v12 = vand.u32 15, %v967_v2  ;;  %v654_v13 = vshra.s32 %v2590_v6, 4 }
  0x94   : > { %1373 = vmatprep.subr.bf16.mxu1 %v710_v4  ;;  %v1016_v14 = vcvt.s32.f32 %v2022_v5  ;;  %v985_v15 = vand.u32 15, %v969_v8  ;;  %v668_v16 = vand.u32 15, %v652_v9  ;;  %v651_v20 = vshra.s32 %v2593_v7, 4 }
  0x95   : > { %v709_v21 = vpack.c.bf16 %v697_v10, %v695_v0  ;;  %v1018_v23 = vcvt.s32.f32 %v2024_v11  ;;  %v2021_v24 = vadd.s32 4294967288, %v983_v12  ;;  %v670_v25 = vand.u32 15, %v654_v13 }
  0x96   : > { %v2023_v27 = vadd.s32 4294967288, %v985_v15  ;;  %v1962_v28 = vadd.s32 4294967288, %v668_v16  ;;  %v653_v29 = vshra.s32 %v2601_v26, 4  ;;  %v667_v30 = vand.u32 15, %v651_v20 }
  0x97   : > { %1374 = vmatpush1.bf16.msra.mxu1 %v709_v21  ;;  %v1030_v31 = vpack.c.bf16 %v1018_v23, %v1016_v14  ;;  %v1015_v32 = vcvt.s32.f32 %v2021_v24  ;;  %v1964_v33 = vadd.s32 4294967288, %v670_v25  ;;  %v972_v34 = vshra.s32 %v2583_v57, 20 }
  0x98   : > { %v1017_v35 = vcvt.s32.f32 %v2023_v27  ;;  %v700_v36 = vcvt.s32.f32 %v1962_v28  ;;  %v669_v39 = vand.u32 15, %v653_v29  ;;  %v1961_v40 = vadd.s32 4294967288, %v667_v30 }
  0x99   : > { %1446 = vmatprep.subr.bf16.mxu0 %v1030_v31  ;;  %v702_v41 = vcvt.s32.f32 %v1964_v33  ;;  %v974_v42 = vshra.s32 %v2590_v6, 20  ;;  %v988_v43 = vand.u32 15, %v972_v34  ;;  %v971_v44 = vshra.s32 %v2593_v7, 20 }
  0x9a   : > { %v1029_v46 = vpack.c.bf16 %v1017_v35, %v1015_v32  ;;  %v1963_v49 = vadd.s32 4294967288, %v669_v39  ;;  %v699_v50 = vcvt.s32.f32 %v1961_v40  ;;  %v973_v51 = vshra.s32 %v2601_v26, 20 }
  0x9b   : > { %v712_v53 = vpack.c.bf16 %v702_v41, %v700_v36  ;;  %v990_v54 = vand.u32 15, %v974_v42  ;;  %v2026_v55 = vadd.s32 4294967288, %v988_v43  ;;  %v987_v56 = vand.u32 15, %v971_v44 }
  0x9c   : > { %1447 = vmatpush1.bf16.msra.mxu0 %v1029_v46  ;;  %v701_v59 = vcvt.s32.f32 %v1963_v49  ;;  %v989_v60 = vand.u32 15, %v973_v51  ;;  %v656_v61 = vshra.s32 %v2608_v45, 4  ;;  %v658_v62 = vshra.s32 %v2612_v52, 4 }
  0x9d   : > { %1375 = vmatprep.subr.bf16.mxu1 %v712_v53  ;;  %v2028_v63 = vadd.s32 4294967288, %v990_v54  ;;  %v1020_v0 = vcvt.s32.f32 %v2026_v55  ;;  %v2025_v1 = vadd.s32 4294967288, %v987_v56  ;;  %v655_v2 = vshra.s32 %v2617_v58, 4 }
  0x9e   : > { %v711_v4 = vpack.c.bf16 %v701_v59, %v699_v50  ;;  %v2027_v5 = vadd.s32 4294967288, %v989_v60  ;;  %v672_v8 = vand.u32 15, %v656_v61  ;;  %v674_v9 = vand.u32 15, %v658_v62 }
  0x9f   : > { %v1022_v10 = vcvt.s32.f32 %v2028_v63  ;;  %v1019_v11 = vcvt.s32.f32 %v2025_v1  ;;  %v657_v12 = vshra.s32 %v2622_v3, 4  ;;  %v671_v13 = vand.u32 15, %v655_v2 }
  0xa0   : > { %1376 = vmatpush1.bf16.msra.mxu1 %v711_v4  ;;  %v1021_v14 = vcvt.s32.f32 %v2027_v5  ;;  %v1966_v15 = vadd.s32 4294967288, %v672_v8  ;;  %v1968_v16 = vadd.s32 4294967288, %v674_v9  ;;  %v976_v20 = vshra.s32 %v2608_v45, 20 }
  0xa1   : > { %v1032_v21 = vpack.c.bf16 %v1022_v10, %v1020_v0  ;;  %v673_v23 = vand.u32 15, %v657_v12  ;;  %v1965_v24 = vadd.s32 4294967288, %v671_v13  ;;  %v978_v25 = vshra.s32 %v2612_v52, 20 }
  0xa2   : > { %v1031_v27 = vpack.c.bf16 %v1021_v14, %v1019_v11  ;;  %v704_v28 = vcvt.s32.f32 %v1966_v15  ;;  %v706_v29 = vcvt.s32.f32 %v1968_v16  ;;  %v992_v30 = vand.u32 15, %v976_v20 }
  0xa3   : > { %1448 = vmatprep.subr.bf16.mxu0 %v1032_v21  ;;  %v1967_v31 = vadd.s32 4294967288, %v673_v23  ;;  %v703_v32 = vcvt.s32.f32 %v1965_v24  ;;  %v994_v33 = vand.u32 15, %v978_v25  ;;  %v975_v34 = vshra.s32 %v2617_v58, 20 }
  0xa4   : > { %1449 = vmatpush1.bf16.msra.mxu0 %v1031_v27  ;;  %v714_v35 = vpack.c.bf16 %v706_v29, %v704_v28  ;;  %v2030_v36 = vadd.s32 4294967288, %v992_v30  ;;  %v977_v39 = vshra.s32 %v2622_v3, 20  ;;  %v724_v40 = vshra.s32 %v2549_v17, 8 }
  0xa5   : > { %v705_v41 = vcvt.s32.f32 %v1967_v31  ;;  %v2032_v42 = vadd.s32 4294967288, %v994_v33  ;;  %v991_v43 = vand.u32 15, %v975_v34  ;;  %v726_v44 = vshra.s32 %v2552_v18, 8 }
  0xa6   : > { %1377 = vmatprep.subr.bf16.mxu1 %v714_v35  ;;  %v1024_v46 = vcvt.s32.f32 %v2030_v36  ;;  %v993_v49 = vand.u32 15, %v977_v39  ;;  %v740_v50 = vand.u32 15, %v724_v40  ;;  %v723_v51 = vshra.s32 %v2555_v19, 8 }
  0xa7   : > { %v713_v53 = vpack.c.bf16 %v705_v41, %v703_v32  ;;  %v1026_v54 = vcvt.s32.f32 %v2032_v42  ;;  %v2029_v55 = vadd.s32 4294967288, %v991_v43  ;;  %v742_v56 = vand.u32 15, %v726_v44 }
  0xa8   : > { %v2031_v59 = vadd.s32 4294967288, %v993_v49  ;;  %v1970_v60 = vadd.s32 4294967288, %v740_v50  ;;  %v725_v61 = vshra.s32 %v2560_v22, 8  ;;  %v739_v62 = vand.u32 15, %v723_v51 }
  0xa9   : > { %1378 = vmatpush1.bf16.msra.mxu1 %v713_v53  ;;  %v1034_v63 = vpack.c.bf16 %v1026_v54, %v1024_v46  ;;  %v1023_v0 = vcvt.s32.f32 %v2029_v55  ;;  %v1972_v1 = vadd.s32 4294967288, %v742_v56  ;;  %v1044_v2 = vshra.s32 %v2549_v17, 24 }
  0xaa   : > { %v1025_v4 = vcvt.s32.f32 %v2031_v59  ;;  %v772_v5 = vcvt.s32.f32 %v1970_v60  ;;  %v741_v8 = vand.u32 15, %v725_v61  ;;  %v1969_v9 = vadd.s32 4294967288, %v739_v62 }
  0xab   : > { %1450 = vmatprep.subr.bf16.mxu0 %v1034_v63  ;;  %v774_v10 = vcvt.s32.f32 %v1972_v1  ;;  %v1046_v11 = vshra.s32 %v2552_v18, 24  ;;  %v1060_v12 = vand.u32 15, %v1044_v2  ;;  %v1043_v13 = vshra.s32 %v2555_v19, 24 }
  0xac   : > { %v1033_v14 = vpack.c.bf16 %v1025_v4, %v1023_v0  ;;  %v1971_v15 = vadd.s32 4294967288, %v741_v8  ;;  %v771_v16 = vcvt.s32.f32 %v1969_v9  ;;  %v1045_v20 = vshra.s32 %v2560_v22, 24 }
  0xad   : > { %v788_v21 = vpack.c.bf16 %v774_v10, %v772_v5  ;;  %v1062_v23 = vand.u32 15, %v1046_v11  ;;  %v2034_v24 = vadd.s32 4294967288, %v1060_v12  ;;  %v1059_v25 = vand.u32 15, %v1043_v13 }
  0xae   : > { %1451 = vmatpush1.bf16.msra.mxu0 %v1033_v14  ;;  %v773_v27 = vcvt.s32.f32 %v1971_v15  ;;  %v1061_v28 = vand.u32 15, %v1045_v20  ;;  %v728_v29 = vshra.s32 %v2569_v37, 8  ;;  %v730_v30 = vshra.s32 %v2572_v38, 8 }
  0xaf   : > { %1379 = vmatprep.subr.bf16.mxu1 %v788_v21  ;;  %v2036_v31 = vadd.s32 4294967288, %v1062_v23  ;;  %v1092_v32 = vcvt.s32.f32 %v2034_v24  ;;  %v2033_v33 = vadd.s32 4294967288, %v1059_v25  ;;  %v727_v34 = vshra.s32 %v2575_v47, 8 }
  0xb0   : > { %v787_v35 = vpack.c.bf16 %v773_v27, %v771_v16  ;;  %v2035_v36 = vadd.s32 4294967288, %v1061_v28  ;;  %v744_v39 = vand.u32 15, %v728_v29  ;;  %v746_v40 = vand.u32 15, %v730_v30 }
  0xb1   : > { %v1094_v41 = vcvt.s32.f32 %v2036_v31  ;;  %v1091_v42 = vcvt.s32.f32 %v2033_v33  ;;  %v729_v43 = vshra.s32 %v2578_v48, 8  ;;  %v743_v44 = vand.u32 15, %v727_v34 }
  0xb2   : > { %1380 = vmatpush1.bf16.msra.mxu1 %v787_v35  ;;  %v1093_v46 = vcvt.s32.f32 %v2035_v36  ;;  %v1974_v49 = vadd.s32 4294967288, %v744_v39  ;;  %v1976_v50 = vadd.s32 4294967288, %v746_v40  ;;  %v1048_v51 = vshra.s32 %v2569_v37, 24 }
  0xb3   : > { %v1108_v53 = vpack.c.bf16 %v1094_v41, %v1092_v32  ;;  %v745_v54 = vand.u32 15, %v729_v43  ;;  %v1973_v55 = vadd.s32 4294967288, %v743_v44  ;;  %v1050_v56 = vshra.s32 %v2572_v38, 24 }
  0xb4   : > { %v1107_v59 = vpack.c.bf16 %v1093_v46, %v1091_v42  ;;  %v776_v60 = vcvt.s32.f32 %v1974_v49  ;;  %v778_v61 = vcvt.s32.f32 %v1976_v50  ;;  %v1064_v62 = vand.u32 15, %v1048_v51 }
  0xb5   : > { %1452 = vmatprep.subr.bf16.mxu0 %v1108_v53  ;;  %v1975_v63 = vadd.s32 4294967288, %v745_v54  ;;  %v775_v0 = vcvt.s32.f32 %v1973_v55  ;;  %v1066_v1 = vand.u32 15, %v1050_v56  ;;  %v1047_v2 = vshra.s32 %v2575_v47, 24 }
  0xb6   : > { %1453 = vmatpush1.bf16.msra.mxu0 %v1107_v59  ;;  %v790_v4 = vpack.c.bf16 %v778_v61, %v776_v60  ;;  %v2038_v5 = vadd.s32 4294967288, %v1064_v62  ;;  %v1049_v8 = vshra.s32 %v2578_v48, 24  ;;  %v732_v9 = vshra.s32 %v2583_v57, 8 }
  0xb7   : > { %v777_v10 = vcvt.s32.f32 %v1975_v63  ;;  %v2040_v11 = vadd.s32 4294967288, %v1066_v1  ;;  %v1063_v12 = vand.u32 15, %v1047_v2  ;;  %v734_v13 = vshra.s32 %v2590_v6, 8 }
  0xb8   : > { %1381 = vmatprep.subr.bf16.mxu1 %v790_v4  ;;  %v1096_v14 = vcvt.s32.f32 %v2038_v5  ;;  %v1065_v15 = vand.u32 15, %v1049_v8  ;;  %v748_v16 = vand.u32 15, %v732_v9  ;;  %v731_v20 = vshra.s32 %v2593_v7, 8 }
  0xb9   : > { %v789_v21 = vpack.c.bf16 %v777_v10, %v775_v0  ;;  %v1098_v23 = vcvt.s32.f32 %v2040_v11  ;;  %v2037_v24 = vadd.s32 4294967288, %v1063_v12  ;;  %v750_v25 = vand.u32 15, %v734_v13 }
  0xba   : > { %v2039_v27 = vadd.s32 4294967288, %v1065_v15  ;;  %v1978_v28 = vadd.s32 4294967288, %v748_v16  ;;  %v733_v29 = vshra.s32 %v2601_v26, 8  ;;  %v747_v30 = vand.u32 15, %v731_v20 }
  0xbb   : > { %1382 = vmatpush1.bf16.msra.mxu1 %v789_v21  ;;  %v1110_v31 = vpack.c.bf16 %v1098_v23, %v1096_v14  ;;  %v1095_v32 = vcvt.s32.f32 %v2037_v24  ;;  %v1980_v33 = vadd.s32 4294967288, %v750_v25  ;;  %v1052_v34 = vshra.s32 %v2583_v57, 24 }
  0xbc   : > { %v1097_v35 = vcvt.s32.f32 %v2039_v27  ;;  %v780_v36 = vcvt.s32.f32 %v1978_v28  ;;  %v749_v39 = vand.u32 15, %v733_v29  ;;  %v1977_v40 = vadd.s32 4294967288, %v747_v30 }
  0xbd   : > { %1454 = vmatprep.subr.bf16.mxu0 %v1110_v31  ;;  %v782_v41 = vcvt.s32.f32 %v1980_v33  ;;  %v1054_v42 = vshra.s32 %v2590_v6, 24  ;;  %v1068_v43 = vand.u32 15, %v1052_v34  ;;  %v1051_v44 = vshra.s32 %v2593_v7, 24 }
  0xbe   : > { %v1109_v46 = vpack.c.bf16 %v1097_v35, %v1095_v32  ;;  %v1979_v49 = vadd.s32 4294967288, %v749_v39  ;;  %v779_v50 = vcvt.s32.f32 %v1977_v40  ;;  %v1053_v51 = vshra.s32 %v2601_v26, 24 }
  0xbf   : > { %v792_v53 = vpack.c.bf16 %v782_v41, %v780_v36  ;;  %v1070_v54 = vand.u32 15, %v1054_v42  ;;  %v2042_v55 = vadd.s32 4294967288, %v1068_v43  ;;  %v1067_v57 = vand.u32 15, %v1051_v44 }
  0xc0   : > { %1455 = vmatpush1.bf16.msra.mxu0 %v1109_v46  ;;  %v781_v56 = vcvt.s32.f32 %v1979_v49  ;;  %v1069_v59 = vand.u32 15, %v1053_v51  ;;  %v736_v60 = vshra.s32 %v2608_v45, 8  ;;  %v738_v61 = vshra.s32 %v2612_v52, 8 }
  0xc1   : > { %1383 = vmatprep.subr.bf16.mxu1 %v792_v53  ;;  %v2044_v62 = vadd.s32 4294967288, %v1070_v54  ;;  %v1100_v63 = vcvt.s32.f32 %v2042_v55  ;;  %v2041_v0 = vadd.s32 4294967288, %v1067_v57  ;;  %v735_v1 = vshra.s32 %v2617_v58, 8 }
  0xc2   : > { %v791_v2 = vpack.c.bf16 %v781_v56, %v779_v50  ;;  %v2043_v4 = vadd.s32 4294967288, %v1069_v59  ;;  %v752_v5 = vand.u32 15, %v736_v60  ;;  %v754_v8 = vand.u32 15, %v738_v61 }
  0xc3   : > { %v1102_v9 = vcvt.s32.f32 %v2044_v62  ;;  %v1099_v10 = vcvt.s32.f32 %v2041_v0  ;;  %v737_v11 = vshra.s32 %v2622_v3, 8  ;;  %v751_v12 = vand.u32 15, %v735_v1 }
  0xc4   : > { %1384 = vmatpush1.bf16.msra.mxu1 %v791_v2  ;;  %v1101_v13 = vcvt.s32.f32 %v2043_v4  ;;  %v1982_v14 = vadd.s32 4294967288, %v752_v5  ;;  %v1984_v15 = vadd.s32 4294967288, %v754_v8  ;;  %v1056_v16 = vshra.s32 %v2608_v45, 24 }
  0xc5   : > { %v1112_v20 = vpack.c.bf16 %v1102_v9, %v1100_v63  ;;  %v753_v21 = vand.u32 15, %v737_v11  ;;  %v1981_v23 = vadd.s32 4294967288, %v751_v12  ;;  %v1058_v24 = vshra.s32 %v2612_v52, 24 }
  0xc6   : > { %v1111_v25 = vpack.c.bf16 %v1101_v13, %v1099_v10  ;;  %v784_v27 = vcvt.s32.f32 %v1982_v14  ;;  %v786_v28 = vcvt.s32.f32 %v1984_v15  ;;  %v1072_v29 = vand.u32 15, %v1056_v16  ;;  %v2264_v10 = vld [vmem:[%s2537_s29] sm:$0xff]  ;;  %v2265_v14 = vld [vmem:[%s2537_s29 + $0x10] sm:$0xff] }
  0xc7   : > { %1456 = vmatprep.subr.bf16.mxu0 %v1112_v20  ;;  %v1983_v30 = vadd.s32 4294967288, %v753_v21  ;;  %v783_v31 = vcvt.s32.f32 %v1981_v23  ;;  %v1074_v32 = vand.u32 15, %v1058_v24  ;;  %v1055_v33 = vshra.s32 %v2617_v58, 24 }
  0xc8   : > { %1457 = vmatpush1.bf16.msra.mxu0 %v1111_v25  ;;  %v794_v34 = vpack.c.bf16 %v786_v28, %v784_v27  ;;  %v2046_v35 = vadd.s32 4294967288, %v1072_v29  ;;  %v1057_v36 = vshra.s32 %v2622_v3, 24  ;;  %v804_v39 = vshra.s32 %v2549_v17, 12 }
  0xc9   : > { %v785_v40 = vcvt.s32.f32 %v1983_v30  ;;  %v2048_v41 = vadd.s32 4294967288, %v1074_v32  ;;  %v1071_v42 = vand.u32 15, %v1055_v33  ;;  %v806_v43 = vshra.s32 %v2552_v18, 12 }
  0xca   : > { %1385 = vmatprep.subr.bf16.mxu1 %v794_v34  ;;  %v1104_v44 = vcvt.s32.f32 %v2046_v35  ;;  %v1073_v46 = vand.u32 15, %v1057_v36  ;;  %v820_v49 = vand.u32 15, %v804_v39  ;;  %v803_v50 = vshra.s32 %v2555_v19, 12 }
  0xcb   : > { %v793_v51 = vpack.c.bf16 %v785_v40, %v783_v31  ;;  %v1106_v53 = vcvt.s32.f32 %v2048_v41  ;;  %v2045_v54 = vadd.s32 4294967288, %v1071_v42  ;;  %v822_v55 = vand.u32 15, %v806_v43  ;;  %v2266_v40 = vld [vmem:[%s2537_s29 + $0x28] sm:$0xff]  ;;  %v2267_v43 = vld [vmem:[%s2537_s29 + $0x38] sm:$0xff] }
  0xcc   : > { %v2047_v57 = vadd.s32 4294967288, %v1073_v46  ;;  %v1986_v56 = vadd.s32 4294967288, %v820_v49  ;;  %v805_v59 = vshra.s32 %v2560_v22, 12  ;;  %v819_v60 = vand.u32 15, %v803_v50  ;;  %v2268_v49 = vld [vmem:[%s2537_s29 + $0x20] sm:$0xff] }
  0xcd   : > { %1386 = vmatpush1.bf16.msra.mxu1 %v793_v51  ;;  %v1114_v61 = vpack.c.bf16 %v1106_v53, %v1104_v44  ;;  %v1103_v62 = vcvt.s32.f32 %v2045_v54  ;;  %v1988_v63 = vadd.s32 4294967288, %v822_v55  ;;  %v2050_v0 = vshrl.u32 %v2549_v17, 28  ;;  %v2269_v55 = vld [vmem:[%s2537_s29 + $0x30] sm:$0xff] }
  0xce   : > { %v1105_v1 = vcvt.s32.f32 %v2047_v57  ;;  %v852_v2 = vcvt.s32.f32 %v1986_v56  ;;  %v821_v19 = vand.u32 15, %v805_v59  ;;  %v1985_v4 = vadd.s32 4294967288, %v819_v60 }
  0xcf   : > { %1458 = vmatprep.subr.bf16.mxu0 %v1114_v61  ;;  %v854_v5 = vcvt.s32.f32 %v1988_v63  ;;  %v2052_v8 = vshrl.u32 %v2552_v18, 28  ;;  %v2066_v9 = vadd.s32 4294967288, %v2050_v0  ;;  %v2049_v11 = vshrl.u32 %v2264_v10, 28 }
  0xd0   : > { %v1113_v22 = vpack.c.bf16 %v1105_v1, %v1103_v62  ;;  %v1987_v12 = vadd.s32 4294967288, %v821_v19  ;;  %v851_v13 = vcvt.s32.f32 %v1985_v4  ;;  %v2051_v15 = vshrl.u32 %v2265_v14, 28  ;;  %v2270_v1 = vld [vmem:[%s2537_s29 + $0x48] sm:$0xff] }
  0xd1   : > { %v868_v16 = vpack.c.bf16 %v854_v5, %v852_v2  ;;  %v2068_v20 = vadd.s32 4294967288, %v2052_v8  ;;  %v1172_v21 = vcvt.s32.f32 %v2066_v9  ;;  %v2065_v17 = vadd.s32 4294967288, %v2049_v11 }
  0xd2   : > { %1459 = vmatpush1.bf16.msra.mxu0 %v1113_v22  ;;  %v853_v23 = vcvt.s32.f32 %v1987_v12  ;;  %v2067_v24 = vadd.s32 4294967288, %v2051_v15  ;;  %v808_v25 = vshra.s32 %v2569_v37, 12  ;;  %v810_v18 = vshra.s32 %v2572_v38, 12 }
  0xd3   : > { %1387 = vmatprep.subr.bf16.mxu1 %v868_v16  ;;  %v1174_v27 = vcvt.s32.f32 %v2068_v20  ;;  %v1171_v28 = vcvt.s32.f32 %v2065_v17  ;;  %v807_v29 = vshra.s32 %v2575_v47, 12  ;;  %v809_v30 = vshra.s32 %v2578_v48, 12  ;;  %v2271_v17 = vld [vmem:[%s2537_s29 + $0x40] sm:$0xff] }
  0xd4   : > { %v867_v31 = vpack.c.bf16 %v853_v23, %v851_v13  ;;  %v1173_v32 = vcvt.s32.f32 %v2067_v24  ;;  %v824_v33 = vand.u32 15, %v808_v25  ;;  %v826_v34 = vand.u32 15, %v810_v18 }
  0xd5   : > { %v1188_v35 = vpack.c.bf16 %v1174_v27, %v1172_v21  ;;  %v823_v36 = vand.u32 15, %v807_v29  ;;  %v825_v39 = vand.u32 15, %v809_v30  ;;  %v2054_v37 = vshrl.u32 %v2266_v40, 28 }
  0xd6   : > { %1388 = vmatpush1.bf16.msra.mxu1 %v867_v31  ;;  %v1187_v38 = vpack.c.bf16 %v1173_v32, %v1171_v28  ;;  %v1990_v41 = vadd.s32 4294967288, %v824_v33  ;;  %v1992_v42 = vadd.s32 4294967288, %v826_v34  ;;  %v2056_v44 = vshrl.u32 %v2267_v43, 28 }
  0xd7   : > { %1460 = vmatprep.subr.bf16.mxu0 %v1188_v35  ;;  %v1989_v47 = vadd.s32 4294967288, %v823_v36  ;;  %v1991_v48 = vadd.s32 4294967288, %v825_v39  ;;  %v2070_v46 = vadd.s32 4294967288, %v2054_v37  ;;  %v2053_v50 = vshrl.u32 %v2268_v49, 28 }
  0xd8   : > { %1461 = vmatpush1.bf16.msra.mxu0 %v1187_v38  ;;  %v856_v51 = vcvt.s32.f32 %v1990_v41  ;;  %v858_v53 = vcvt.s32.f32 %v1992_v42  ;;  %v2072_v54 = vadd.s32 4294967288, %v2056_v44  ;;  %v2055_v57 = vshrl.u32 %v2269_v55, 28 }
  0xd9   : > { %v855_v56 = vcvt.s32.f32 %v1989_v47  ;;  %v857_v59 = vcvt.s32.f32 %v1991_v48  ;;  %v1176_v60 = vcvt.s32.f32 %v2070_v46  ;;  %v2069_v61 = vadd.s32 4294967288, %v2053_v50 }
  0xda   : > { %v870_v62 = vpack.c.bf16 %v858_v53, %v856_v51  ;;  %v1178_v63 = vcvt.s32.f32 %v2072_v54  ;;  %v2071_v0 = vadd.s32 4294967288, %v2055_v57  ;;  %v812_v2 = vshra.s32 %v2270_v1, 12 }
  0xdb   : > { %v869_v19 = vpack.c.bf16 %v857_v59, %v855_v56  ;;  %v1175_v4 = vcvt.s32.f32 %v2069_v61  ;;  %v814_v5 = vshra.s32 %v2590_v6, 12  ;;  %v811_v8 = vshra.s32 %v2593_v7, 12 }
  0xdc   : > { %1389 = vmatprep.subr.bf16.mxu1 %v870_v62  ;;  %v1190_v9 = vpack.c.bf16 %v1178_v63, %v1176_v60  ;;  %v1177_v10 = vcvt.s32.f32 %v2071_v0  ;;  %v828_v11 = vand.u32 15, %v812_v2  ;;  %v813_v22 = vshra.s32 %v2601_v26, 12  ;;  %v1509_v2 = vld [vmem:[%s2527_s22] sm:$0xff] }
  0xdd   : > { %1390 = vmatpush1.bf16.msra.mxu1 %v869_v19  ;;  %v830_v12 = vand.u32 15, %v814_v5  ;;  %v827_v13 = vand.u32 15, %v811_v8  ;;  %v2058_v14 = vshrl.u32 %v2270_v1, 28  ;;  %v2060_v15 = vshrl.u32 %v2590_v6, 28  ;;  %v1510_v19 = vld [vmem:[%s2527_s22 + $0x8] sm:$0xff]  ;;  %v1511_v8 = vld [vmem:[%s2527_s22 + $0x10] sm:$0xff] }
  0xde   : > { %1462 = vmatprep.subr.bf16.mxu0 %v1190_v9  ;;  %v1189_v16 = vpack.c.bf16 %v1177_v10, %v1175_v4  ;;  %v1994_v20 = vadd.s32 4294967288, %v828_v11  ;;  %v829_v21 = vand.u32 15, %v813_v22  ;;  %v2057_v23 = vshrl.u32 %v2271_v17, 28  ;;  %v1512_v9 = vld [vmem:[%s2527_s22 + $0x18] sm:$0xff] }
  0xdf   : > { %v1996_v24 = vadd.s32 4294967288, %v830_v12  ;;  %v1993_v7 = vadd.s32 4294967288, %v827_v13  ;;  %v2074_v25 = vadd.s32 4294967288, %v2058_v14  ;;  %v2076_v18 = vadd.s32 4294967288, %v2060_v15  ;;  %v1513_v14 = vld [vmem:[%s2527_s22 + $0x20] sm:$0xff]  ;;  %v1514_v15 = vld [vmem:[%s2527_s22 + $0x28] sm:$0xff] }
  0xe0   : > { %1463 = vmatpush1.bf16.msra.mxu0 %v1189_v16  ;;  %v860_v27 = vcvt.s32.f32 %v1994_v20  ;;  %v1995_v28 = vadd.s32 4294967288, %v829_v21  ;;  %v2059_v29 = vshrl.u32 %v2601_v26, 28  ;;  %v2073_v30 = vadd.s32 4294967288, %v2057_v23  ;;  %v1515_v16 = vld [vmem:[%s2527_s22 + $0x30] sm:$0xff] }
  0xe1   : > { %v862_v31 = vcvt.s32.f32 %v1996_v24  ;;  %v859_v32 = vcvt.s32.f32 %v1993_v7  ;;  %v1180_v33 = vcvt.s32.f32 %v2074_v25  ;;  %v1182_v6 = vcvt.s32.f32 %v2076_v18  ;;  %v2240_v20 = vld [vmem:[%s2545_s18] ss:$16 sps:$4 sm:$0xff]   ;;  %v1516_v24 = vld [vmem:[%s2527_s22 + $0x38] sm:$0xff]  ;;  %v2246_v25 = vld [vmem:[%s2545_s18 + $0x24] ss:$16 sps:$4 sm:$0xff]  }
  0xe2   : > { %v861_v34 = vcvt.s32.f32 %v1995_v28  ;;  %v2075_v35 = vadd.s32 4294967288, %v2059_v29  ;;  %v1179_v36 = vcvt.s32.f32 %v2073_v30  ;;  %v816_v39 = vshra.s32 %v2608_v45, 12  ;;  %v2243_v29 = vld [vmem:[%s2545_s18 + $0x8] ss:$16 sps:$4 sm:$0xff]  }
  0xe3   : > { %v872_v40 = vpack.c.bf16 %v862_v31, %v860_v27  ;;  %v1192_v37 = vpack.c.bf16 %v1182_v6, %v1180_v33  ;;  %v818_v38 = vshra.s32 %v2612_v52, 12  ;;  %v815_v41 = vshra.s32 %v2617_v58, 12  ;;  %v2249_v31 = vld [vmem:[%s2545_s18 + $0x2c] ss:$16 sps:$4 sm:$0xff]  }
  0xe4   : > { %v871_v42 = vpack.c.bf16 %v861_v34, %v859_v32  ;;  %v1181_v43 = vcvt.s32.f32 %v2075_v35  ;;  %v832_v44 = vand.u32 15, %v816_v39  ;;  %v817_v26 = vshra.s32 %v2622_v3, 12  ;;  %v2248_v39 = vld [vmem:[%s2545_s18 + $0x20] ss:$16 sps:$4 sm:$0xff]  }
  0xe5   : > { %1391 = vmatprep.subr.bf16.mxu1 %v872_v40  ;;  %1464 = vmatprep.subr.bf16.mxu0 %v1192_v37  ;;  %v834_v47 = vand.u32 15, %v818_v38  ;;  %v831_v48 = vand.u32 15, %v815_v41  ;;  %v2062_v46 = vshrl.u32 %v2608_v45, 28  ;;  %v2064_v49 = vshrl.u32 %v2612_v52, 28  ;;  %v2252_v40 = vld [vmem:[%s2545_s18 + $0x44] ss:$16 sps:$4 sm:$0xff]  }
  0xe6   : > { %1392 = vmatpush1.bf16.msra.mxu1 %v871_v42  ;;  %v1191_v50 = vpack.c.bf16 %v1181_v43, %v1179_v36  ;;  %v1998_v51 = vadd.s32 4294967288, %v832_v44  ;;  %v833_v53 = vand.u32 15, %v817_v26  ;;  %v2061_v54 = vshrl.u32 %v2617_v58, 28  ;;  %v2251_v37 = vld [vmem:[%s2545_s18 + $0x28] ss:$16 sps:$4 sm:$0xff]  }
  0xe7   : > { %v2000_v55 = vadd.s32 4294967288, %v834_v47  ;;  %v1997_v57 = vadd.s32 4294967288, %v831_v48  ;;  %v2078_v56 = vadd.s32 4294967288, %v2062_v46  ;;  %v2080_v59 = vadd.s32 4294967288, %v2064_v49  ;;  %v2255_v38 = vld [vmem:[%s2545_s18 + $0x4c] ss:$16 sps:$4 sm:$0xff]  }
  0xe8   : > { %1465 = vmatpush1.bf16.msra.mxu0 %v1191_v50  ;;  %v864_v60 = vcvt.s32.f32 %v1998_v51  ;;  %v1999_v61 = vadd.s32 4294967288, %v833_v53  ;;  %v2063_v45 = vshrl.u32 %v2622_v3, 28  ;;  %v2077_v52 = vadd.s32 4294967288, %v2061_v54  ;;  %v2254_v41 = vld [vmem:[%s2545_s18 + $0x40] ss:$16 sps:$4 sm:$0xff]  }
  0xe9   : > { %v866_v62 = vcvt.s32.f32 %v2000_v55  ;;  %v863_v63 = vcvt.s32.f32 %v1997_v57  ;;  %v1184_v0 = vcvt.s32.f32 %v2078_v56  ;;  %v1186_v1 = vcvt.s32.f32 %v2080_v59  ;;  %v2258_v42 = vld [vmem:[%s2545_s18 + $0x64] ss:$16 sps:$4 sm:$0xff]   ;;  %v2257_v43 = vld [vmem:[%s2545_s18 + $0x48] ss:$16 sps:$4 sm:$0xff]   ;;  %v2261_v44 = vld [vmem:[%s2545_s18 + $0x6c] ss:$16 sps:$4 sm:$0xff]  }
  0xea   : > { %v865_v58 = vcvt.s32.f32 %v1999_v61  ;;  %v2079_v4 = vadd.s32 4294967288, %v2063_v45  ;;  %v1183_v5 = vcvt.s32.f32 %v2077_v52  ;;  %v2373_v3 = vmov 0   ;;  %v2260_v26 = vld [vmem:[%s2545_s18 + $0x60] ss:$16 sps:$4 sm:$0xff]   ;;  %v2263_v47 = vld [vmem:[%s2545_s18 + $0x68] ss:$16 sps:$4 sm:$0xff]  }
  0xeb   : > { %v874_v10 = vpack.c.bf16 %v866_v62, %v864_v60  ;;  %v1194_v11 = vpack.c.bf16 %v1186_v1, %v1184_v0  ;;  %2218 = vset.pattern.permute.xlu0 %v2373_v3  ;;  %v1517_v22 = vstv %s2344_s7  ;;  %2229 = vset.pattern.permute.xlu1 %v2373_v3  ;;  %v2374_v21 = vmov 0.0   ;;  %v1558_v50 = vld [vmem:[%s2532_s16] sm:$0x3] }
  0xec   : > { %v873_v12 = vpack.c.bf16 %v865_v58, %v863_v63  ;;  %v1185_v13 = vcvt.s32.f32 %v2079_v4  ;;  %vm1518_vm0 = vcmp.eq.s32.totalorder %v1509_v2, %v1517_v22  ;;  %vm1519_vm1 = vcmp.eq.s32.totalorder %v1510_v19, %v1517_v22 }
  0xed   : > { %1393 = vmatprep.subr.bf16.mxu1 %v874_v10  ;;  %1466 = vmatprep.subr.bf16.mxu0 %v1194_v11  ;;  %v2097_v17 = vsel %vm1518_vm0, 1.0, %v2374_v21  ;;  %v2098_v23 = vsel %vm1519_vm1, 1.0, %v2374_v21  ;;  %vm1520_vm2 = vcmp.eq.s32.totalorder %v1511_v8, %v1517_v22  ;;  %vm1521_vm3 = vcmp.eq.s32.totalorder %v1512_v9, %v1517_v22  ;;  %v1543_v9 = vld [vmem:[#allocation2 + $0x8] sm:$0xff] }
  0xee   : > { %1394 = vmatpush1.bf16.msra.mxu1 %v873_v12  ;;  %v1193_v7 = vpack.c.bf16 %v1185_v13, %v1183_v5  ;;  %v2219_v18 = vpack.i.bf16 %v2098_v23, %v2097_v17  ;;  %v2099_v27 = vsel %vm1520_vm2, 1.0, %v2374_v21  ;;  %v2100_v28 = vsel %vm1521_vm3, 1.0, %v2374_v21  ;;  %v1542_v5 = vld [vmem:[#allocation2] sm:$0xff] }
  0xef   : > { %v2224_v30 = vpack.i.bf16 %v2100_v28, %v2099_v27  ;;  %vm1522_vm4 = vcmp.eq.s32.totalorder %v1513_v14, %v1517_v22  ;;  %vm1523_vm5 = vcmp.eq.s32.totalorder %v1514_v15, %v1517_v22  ;;  %vm1524_vm6 = vcmp.eq.s32.totalorder %v1515_v16, %v1517_v22 }
  0xf0   : > { %1467 = vmatpush1.bf16.msra.mxu0 %v1193_v7  ;;  %2220 = vperm.xlu0 %2218, %v2219_v18   ;;  %v2101_v32 = vsel %vm1522_vm4, 1.0, %v2374_v21  ;;  %v2102_v33 = vsel %vm1523_vm5, 1.0, %v2374_v21  ;;  %vm1525_vm7 = vcmp.eq.s32.totalorder %v1516_v24, %v1517_v22  ;;  %v2103_v6 = vsel %vm1524_vm6, 1.0, %v2374_v21  ;;  %v1544_v22 = vld [vmem:[#allocation2 + $0x10] sm:$0xff] }
  0xf1   : > { %1396 = vmatmul.mubr.bf16.vlgmr.msra.gmra.mrb[0].mxu1 %v2240_v20  ;;  %v2230_v34 = vpack.i.bf16 %v2102_v33, %v2101_v32  ;;  %v2104_v35 = vsel %vm1525_vm7, 1.0, %v2374_v21  ;;  %v1560_v48 = vlaneseq  ;;  %v1545_v20 = vld [vmem:[#allocation2 + $0x18] sm:$0xff] }
  0xf2   : > { %1405 = vmatprep.mubr.bf16.mxu1 %v2246_v25  ;;  %v2235_v36 = vpack.i.bf16 %v2104_v35, %v2103_v6 }
  0xf3   : > { %1469 = vmatmul.mubr.bf16.vlgmr.msra.gmra.mrb[0].mxu0 %v2243_v29  ;;  %2231 = vperm.xlu1 %2229, %v2230_v34   ;;  %v1561_v46 = vshrl.u32 %v1560_v48, 7 }
  0xf4   : > { %1478 = vmatprep.mubr.bf16.mxu0 %v2249_v31  ;;  %2225 = vperm.xlu0 %2218, %v2224_v30  }
  0xf5   : > { %v1562_v49 = vsub.s32 0, %v1561_v46  ;;  %v1566_v51 = vsub.s32 1, %v1561_v46 }
  0xf7   : > { %2236 = vperm.xlu1 %2229, %v2235_v36   ;;  %v2749_v57 = vrot.slane %v1558_v50, %v1562_v49  ;;  %v2751_v60 = vrot.slane %v1558_v50, %v1566_v51  ;;  %v1549_v49 = vld [vmem:[#allocation2 + $0x38] sm:$0xff] }
  0xf9   : > { %1406 = vmatmul.mubr.bf16.gmra.mrb[4].mxu1 %v2248_v39  ;;  %v1546_v39 = vld [vmem:[#allocation2 + $0x20] sm:$0xff] }
  0xfa   : > { %1415 = vmatprep.mubr.bf16.mxu1 %v2252_v40 }
  0xfb   : > { %1479 = vmatmul.mubr.bf16.gmra.mrb[4].mxu0 %v2251_v37  ;;  %v1547_v37 = vld [vmem:[#allocation2 + $0x28] sm:$0xff] }
  0xfc   : > { %1488 = vmatprep.mubr.bf16.mxu0 %v2255_v38 }
 0x101   : > { %1416 = vmatmul.mubr.bf16.gmra.mrb[8].mxu1 %v2254_v41 }
 0x102   : > { %1425 = vmatprep.mubr.bf16.mxu1 %v2258_v42 }
 0x103   : > { %1489 = vmatmul.mubr.bf16.gmra.mrb[8].mxu0 %v2257_v43  ;;  %v1548_v43 = vld [vmem:[#allocation2 + $0x30] sm:$0xff] }
 0x104   : > { %1498 = vmatprep.mubr.bf16.mxu0 %v2261_v44 }
 0x109   : > { %1426 = vmatmul.mubr.bf16.gmra.mrb[12].mxu1 %v2260_v26 }
 0x10b   : > { %1499 = vmatmul.mubr.bf16.gmra.mrb[12].mxu0 %v2263_v47 }
 0x16f   : > { %v2221_v54 = vpop.permute.xlu0 %2220 }
 0x170   : > { %v2222_v62 = vunpack.i.l.bf16 %v2221_v54  ;;  %v2223_v2 = vunpack.i.h.bf16 %v2221_v54 }
 0x172   : > { %v2232_v47 = vpop.permute.xlu1 %2231 }
 0x173   : > { %v2226_v14 = vpop.permute.xlu0 %2225 }
 0x174   : > { %v2227_v29 = vunpack.i.l.bf16 %v2226_v14  ;;  %v2228_v6 = vunpack.i.h.bf16 %v2226_v14 }
 0x176   : > { %v2237_v14 = vpop.permute.xlu1 %2236 }
 0x1c4   : > { %v1397_v53 = vpop.f32.mrb[0].mxu1 }
 0x1c5   : > { %v1399_v55 = vpop.f32.mrb[1].mxu1 }
 0x1c6   : > { %v1401_v56 = vpop.f32.mrb[2].mxu1  ;;  %v1470_v59 = vpop.f32.mrb[0].mxu0 }
 0x1c7   : > { %v1471_v61 = vadd.f32 %v1470_v59, %v1397_v53  ;;  %v1403_v45 = vpop.f32.mrb[3].mxu1  ;;  %v1472_v52 = vpop.f32.mrb[1].mxu0 }
 0x1c8   : > { %v1473_v63 = vadd.f32 %v1472_v52, %v1399_v55  ;;  %v1474_v0 = vpop.f32.mrb[2].mxu0  ;;  %v2233_v52 = vunpack.i.l.bf16 %v2232_v47 }
 0x1c9   : > { %v1570_v1 = vmul.f32 %v2749_v57, %v1471_v61  ;;  %v1475_v19 = vadd.f32 %v1474_v0, %v1401_v56  ;;  %v1476_v58 = vpop.f32.mrb[3].mxu0 }
 0x1ca   : > { %v1571_v4 = vmul.f32 %v2751_v60, %v1473_v63  ;;  %v1477_v8 = vadd.f32 %v1476_v58, %v1403_v45 }
 0x1cb   : > { %v1626_v10 = vmul.f32 %v2222_v62, %v1570_v1  ;;  %v1572_v11 = vmul.f32 %v2749_v57, %v1475_v19 }
 0x1cc   : > { %v1627_v3 = vmul.f32 %v2222_v62, %v1571_v4  ;;  %v1573_v12 = vmul.f32 %v2751_v60, %v1477_v8  ;;  %v1407_v13 = vpop.f32.mrb[4].mxu1 }
 0x1cd   : > { %v1642_v15 = vadd.f32 %v1626_v10, %v1542_v5  ;;  %v1628_v16 = vmul.f32 %v2223_v2, %v1572_v11  ;;  %v1409_v21 = vpop.f32.mrb[5].mxu1  ;;  %v1550_v5 = vld [vmem:[#allocation2 + $0x40] sm:$0xff] }
 0x1ce   : > { %v1643_v17 = vadd.f32 %v1627_v3, %v1543_v9  ;;  %v1629_v23 = vmul.f32 %v2223_v2, %v1573_v12  ;;  %v1411_v24 = vpop.f32.mrb[6].mxu1  ;;  %v1480_v7 = vpop.f32.mrb[4].mxu0  ;;  %v2234_v2 = vunpack.i.h.bf16 %v2232_v47  ;;  %v1551_v9 = vld [vmem:[#allocation2 + $0x48] sm:$0xff] }
 0x1cf   : > { %1658 = vst [vmem:[#allocation2] sm:$0xff] %v1642_v15  ;;  %v1644_v25 = vadd.f32 %v1628_v16, %v1544_v22  ;;  %v1481_v18 = vadd.f32 %v1480_v7, %v1407_v13  ;;  %v1413_v27 = vpop.f32.mrb[7].mxu1  ;;  %v1482_v28 = vpop.f32.mrb[5].mxu0  ;;  %v1552_v22 = vld [vmem:[#allocation2 + $0x50] sm:$0xff] }
 0x1d0   : > { %1659 = vst [vmem:[#allocation2 + $0x8] sm:$0xff] %v1643_v17  ;;  %v1645_v30 = vadd.f32 %v1629_v23, %v1545_v20  ;;  %v1483_v31 = vadd.f32 %v1482_v28, %v1409_v21  ;;  %v1484_v32 = vpop.f32.mrb[6].mxu0  ;;  %v1553_v20 = vld [vmem:[#allocation2 + $0x58] sm:$0xff] }
 0x1d1   : > { %1660 = vst [vmem:[#allocation2 + $0x10] sm:$0xff] %v1644_v25  ;;  %v1574_v33 = vmul.f32 %v2749_v57, %v1481_v18  ;;  %v1485_v34 = vadd.f32 %v1484_v32, %v1411_v24  ;;  %v1486_v35 = vpop.f32.mrb[7].mxu0 }
 0x1d2   : > { %1661 = vst [vmem:[#allocation2 + $0x18] sm:$0xff] %v1645_v30  ;;  %v1575_v36 = vmul.f32 %v2751_v60, %v1483_v31  ;;  %v1487_v40 = vadd.f32 %v1486_v35, %v1413_v27  ;;  %v2238_v27 = vunpack.i.l.bf16 %v2237_v14  ;;  %v1554_v35 = vld [vmem:[#allocation2 + $0x60] sm:$0xff] }
 0x1d3   : > { %v1630_v38 = vmul.f32 %v2227_v29, %v1574_v33  ;;  %v1576_v41 = vmul.f32 %v2749_v57, %v1485_v34 }
 0x1d4   : > { %v1631_v42 = vmul.f32 %v2227_v29, %v1575_v36  ;;  %v1577_v44 = vmul.f32 %v2751_v60, %v1487_v40  ;;  %v1417_v26 = vpop.f32.mrb[8].mxu1  ;;  %v2239_v40 = vunpack.i.h.bf16 %v2237_v14 }
 0x1d5   : > { %v1646_v48 = vadd.f32 %v1630_v38, %v1546_v39  ;;  %v1632_v46 = vmul.f32 %v2228_v6, %v1576_v41  ;;  %v1419_v50 = vpop.f32.mrb[9].mxu1  ;;  %v1555_v38 = vld [vmem:[#allocation2 + $0x68] sm:$0xff] }
 0x1d6   : > { %v1647_v51 = vadd.f32 %v1631_v42, %v1547_v37  ;;  %v1633_v53 = vmul.f32 %v2228_v6, %v1577_v44  ;;  %v1421_v54 = vpop.f32.mrb[10].mxu1  ;;  %v1490_v55 = vpop.f32.mrb[8].mxu0 }
 0x1d7   : > { %1662 = vst [vmem:[#allocation2 + $0x20] sm:$0xff] %v1646_v48  ;;  %v1648_v56 = vadd.f32 %v1632_v46, %v1548_v43  ;;  %v1491_v59 = vadd.f32 %v1490_v55, %v1417_v26  ;;  %v1423_v61 = vpop.f32.mrb[11].mxu1  ;;  %v1492_v45 = vpop.f32.mrb[9].mxu0  ;;  %v1556_v43 = vld [vmem:[#allocation2 + $0x70] sm:$0xff]  ;;  %v1557_v48 = vld [vmem:[#allocation2 + $0x78] sm:$0xff] }
 0x1d8   : > { %1663 = vst [vmem:[#allocation2 + $0x28] sm:$0xff] %v1647_v51  ;;  %v1649_v62 = vadd.f32 %v1633_v53, %v1549_v49  ;;  %v1493_v63 = vadd.f32 %v1492_v45, %v1419_v50  ;;  %v1494_v0 = vpop.f32.mrb[10].mxu0 }
 0x1d9   : > { %1664 = vst [vmem:[#allocation2 + $0x30] sm:$0xff] %v1648_v56  ;;  %v1578_v1 = vmul.f32 %v2749_v57, %v1491_v59  ;;  %v1495_v19 = vadd.f32 %v1494_v0, %v1421_v54  ;;  %v1496_v58 = vpop.f32.mrb[11].mxu0 }
 0x1da   : > { %1665 = vst [vmem:[#allocation2 + $0x38] sm:$0xff] %v1649_v62  ;;  %v1579_v4 = vmul.f32 %v2751_v60, %v1493_v63  ;;  %v1497_v8 = vadd.f32 %v1496_v58, %v1423_v61 }
 0x1db   : > { %v1634_v10 = vmul.f32 %v2233_v52, %v1578_v1  ;;  %v1580_v11 = vmul.f32 %v2749_v57, %v1495_v19 }
 0x1dc   : > { %v1635_v3 = vmul.f32 %v2233_v52, %v1579_v4  ;;  %v1581_v12 = vmul.f32 %v2751_v60, %v1497_v8  ;;  %v1427_v13 = vpop.f32.mrb[12].mxu1 }
 0x1dd   : > { %v1650_v15 = vadd.f32 %v1634_v10, %v1550_v5  ;;  %v1636_v16 = vmul.f32 %v2234_v2, %v1580_v11  ;;  %v1429_v21 = vpop.f32.mrb[13].mxu1 }
 0x1de   : > { %v1651_v17 = vadd.f32 %v1635_v3, %v1551_v9  ;;  %v1637_v23 = vmul.f32 %v2234_v2, %v1581_v12  ;;  %v1431_v24 = vpop.f32.mrb[14].mxu1  ;;  %v1500_v7 = vpop.f32.mrb[12].mxu0 }
 0x1df   : > { %1666 = vst [vmem:[#allocation2 + $0x40] sm:$0xff] %v1650_v15  ;;  %v1652_v25 = vadd.f32 %v1636_v16, %v1552_v22  ;;  %v1501_v18 = vadd.f32 %v1500_v7, %v1427_v13  ;;  %v1433_v28 = vpop.f32.mrb[15].mxu1  ;;  %v1502_v29 = vpop.f32.mrb[13].mxu0 }
 0x1e0   : > { %1667 = vst [vmem:[#allocation2 + $0x48] sm:$0xff] %v1651_v17  ;;  %v1653_v30 = vadd.f32 %v1637_v23, %v1553_v20  ;;  %v1503_v31 = vadd.f32 %v1502_v29, %v1429_v21  ;;  %v1504_v32 = vpop.f32.mrb[14].mxu0 }
 0x1e1   : > { %1668 = vst [vmem:[#allocation2 + $0x50] sm:$0xff] %v1652_v25  ;;  %v1582_v33 = vmul.f32 %v2749_v57, %v1501_v18  ;;  %v1505_v6 = vadd.f32 %v1504_v32, %v1431_v24  ;;  %v1506_v34 = vpop.f32.mrb[15].mxu0 }
 0x1e2   : > { %1669 = vst [vmem:[#allocation2 + $0x58] sm:$0xff] %v1653_v30  ;;  %v1583_v36 = vmul.f32 %v2751_v60, %v1503_v31  ;;  %v1507_v39 = vadd.f32 %v1506_v34, %v1433_v28 }
 0x1e3   : > { %v1638_v37 = vmul.f32 %v2238_v27, %v1582_v33  ;;  %v1584_v41 = vmul.f32 %v2749_v57, %v1505_v6 }
 0x1e4   : > { %v1639_v42 = vmul.f32 %v2238_v27, %v1583_v36  ;;  %v1585_v44 = vmul.f32 %v2751_v60, %v1507_v39 }
 0x1e5   : > { %v1654_v26 = vadd.f32 %v1638_v37, %v1554_v35  ;;  %v1640_v47 = vmul.f32 %v2239_v40, %v1584_v41 }
 0x1e6   : > { %v1655_v46 = vadd.f32 %v1639_v42, %v1555_v38  ;;  %v1641_v49 = vmul.f32 %v2239_v40, %v1585_v44 }
 0x1e7   : > { %1670 = vst [vmem:[#allocation2 + $0x60] sm:$0xff] %v1654_v26  ;;  %v1656_v50 = vadd.f32 %v1640_v47, %v1556_v43 }
 0x1e8   : > { %1671 = vst [vmem:[#allocation2 + $0x68] sm:$0xff] %v1655_v46  ;;  %v1657_v51 = vadd.f32 %v1641_v49, %v1557_v48 }
 0x1e9   : > { %1672 = vst [vmem:[#allocation2 + $0x70] sm:$0xff] %v1656_v50 }
 0x1ea   : > { %1673 = vst [vmem:[#allocation2 + $0x78] sm:$0xff] %v1657_v51 }
 0x1eb PF: > { %p1674_p1 = scmp.eq.s32.totalorder %s2348_s8, 1  ;;  %p1675_p2 = scmp.eq.s32.totalorder %s2344_s7, 7 }
 0x1ed   : > { %p1676_p3 = pnand %p1675_p2, %p1674_p1 }
 0x1ee   : > { %v1680_v57 = vld [vmem:[#allocation2] sm:$0xff] (!%p1676_p3)  ;;  %v1681_v60 = vld [vmem:[#allocation2 + $0x8] sm:$0xff] (!%p1676_p3)  ;;  %v1682_v53 = vld [vmem:[#allocation2 + $0x10] sm:$0xff] (!%p1676_p3) }
 0x1ef   : > { %1679 = sbr.rel (%p1676_p3) target bundleno = 503 (0x1f7), region = 71  ;;  %v2117_v54 = vpack.c.bf16 (!%p1676_p3), %v1681_v60, %v1680_v57  ;;  %v1683_v55 = vld [vmem:[#allocation2 + $0x18] sm:$0xff] (!%p1676_p3)  ;;  %v1684_v56 = vld [vmem:[#allocation2 + $0x20] sm:$0xff] (!%p1676_p3)  ;;  %v1685_v59 = vld [vmem:[#allocation2 + $0x28] sm:$0xff] (!%p1676_p3) }
 0x1f0   : > { %v2118_v61 = vpack.c.bf16 (!%p1676_p3), %v1683_v55, %v1682_v53  ;;  %v2119_v45 = vpack.c.bf16 (!%p1676_p3), %v1685_v59, %v1684_v56  ;;  %v1686_v52 = vld [vmem:[#allocation2 + $0x30] sm:$0xff] (!%p1676_p3)  ;;  %v1687_v62 = vld [vmem:[#allocation2 + $0x38] sm:$0xff] (!%p1676_p3)  ;;  %v1688_v63 = vld [vmem:[#allocation2 + $0x40] sm:$0xff] (!%p1676_p3) }
 0x1f1   : > { %1744 = vst [vmem:[%s2542_s11] sm:$0xff] (!%p1676_p3), %v2117_v54  ;;  %v2120_v0 = vpack.c.bf16 (!%p1676_p3), %v1687_v62, %v1686_v52  ;;  %v1689_v1 = vld [vmem:[#allocation2 + $0x48] sm:$0xff] (!%p1676_p3)  ;;  %v1690_v2 = vld [vmem:[#allocation2 + $0x50] sm:$0xff] (!%p1676_p3)  ;;  %v1691_v19 = vld [vmem:[#allocation2 + $0x58] sm:$0xff] (!%p1676_p3) }
 0x1f2   : > { %1745 = vst [vmem:[%s2542_s11 + $0x8] sm:$0xff] (!%p1676_p3), %v2118_v61  ;;  %1746 = vst [vmem:[%s2542_s11 + $0x10] sm:$0xff] (!%p1676_p3), %v2119_v45  ;;  %v2121_v58 = vpack.c.bf16 (!%p1676_p3), %v1689_v1, %v1688_v63  ;;  %v2122_v4 = vpack.c.bf16 (!%p1676_p3), %v1691_v19, %v1690_v2  ;;  %v1692_v5 = vld [vmem:[#allocation2 + $0x60] sm:$0xff] (!%p1676_p3)  ;;  %v1693_v8 = vld [vmem:[#allocation2 + $0x68] sm:$0xff] (!%p1676_p3) }
 0x1f3   : > { %v1694_v9 = vld [vmem:[#allocation2 + $0x70] sm:$0xff] (!%p1676_p3)  ;;  %1747 = vst [vmem:[%s2542_s11 + $0x18] sm:$0xff] (!%p1676_p3), %v2120_v0  ;;  %v2123_v10 = vpack.c.bf16 (!%p1676_p3), %v1693_v8, %v1692_v5  ;;  %v1695_v11 = vld [vmem:[#allocation2 + $0x78] sm:$0xff] (!%p1676_p3) }
 0x1f4   : > { %1748 = vst [vmem:[%s2542_s11 + $0x20] sm:$0xff] (!%p1676_p3), %v2121_v58  ;;  %1749 = vst [vmem:[%s2542_s11 + $0x28] sm:$0xff] (!%p1676_p3), %v2122_v4  ;;  %v2124_v3 = vpack.c.bf16 (!%p1676_p3), %v1695_v11, %v1694_v9 }
 0x1f5   : > { %1750 = vst [vmem:[%s2542_s11 + $0x30] sm:$0xff] (!%p1676_p3), %v2123_v10 }
 0x1f6   : > { %1751 = vst [vmem:[%s2542_s11 + $0x38] sm:$0xff] %v2124_v3 }
 0x1f7 PF: > { %s26_s13 = sadd.s32 1, %s2368_s13   ;;  %s2824_s8 = sld [smem:[#allocation9_spill]] }
 0x1f8   : > { %p23_p4 = scmp.ge.s32.totalorder %s26_s13, 34   ;;  %s2825_s9 = sld [smem:[#allocation10_spill]] }
 0x1f9   : > { %s2826_s12 = sld [smem:[#allocation11_spill]]  ;;  %s2827_s11 = sld [smem:[#allocation12_spill]] }
 0x1fa   : > { %s2828_s14 = sld [smem:[#allocation13_spill]]  ;;  %s2829_s1 = smov %s2340_s30 }
 0x1fb   : > { %s2830_s30 = smov %s2481_s21  ;;  %s2831_s7 = smov %s2356_s10 }
 0x1fc   :  { %25 = sbr.rel (!%p23_p4) target bundleno = 31 (0x1f), region = 115 }
 0x1ff   : > { %s2832_s10 = smov %s2826_s12 }
 0x200   : > { %s2833_s12 = smov %s2828_s14 }

</bundles_post_ra>
